<compile_context>
chip_gen: v5e
topology: v5e:2x2
jax: 0.10.0
libtpu: 0.0.40
codegen_flags: <defaults>
</compile_context>

<pallas_src>
import math

import jax
import jax.numpy as jnp
from jax import lax
from jax.experimental import pallas as pl
from jax.experimental.pallas import tpu as pltpu

LN_EPS = 1e-5

# Order of stacked weight arguments passed to the kernel (after x).
_PARAM_ORDER = ("wqkv", "bqkv", "wo", "bo", "w1", "b1", "w2", "b2",
                "g1", "be1", "g2", "be2")


# ---------------------------------------------------------------------------
# Kernel: runs ALL encoder layers for one batch element (one grid step).
# ---------------------------------------------------------------------------
def _encoder_stack_kernel(x_ref,
                          wqkv_ref, bqkv_ref, wo_ref, bo_ref,
                          w1_ref, b1_ref, w2_ref, b2_ref,
                          g1_ref, be1_ref, g2_ref, be2_ref,
                          o_ref):
    L, H, E, three_dh = wqkv_ref.shape
    Dh = three_dh // 3

    x = x_ref[0].astype(jnp.float32)                       # (S, E)
    S = x.shape[0]

    for l in range(L):                                     # static unroll; weights stay VMEM-resident
        # ---- fused QKV projection; heads are the (batched) leading dim ----
        xh = jnp.broadcast_to(x, (H, S, E))
        qkv = jnp.einsum("hse,hef->hsf", xh, wqkv_ref[l],
                         preferred_element_type=jnp.float32) + bqkv_ref[l]
        q = qkv[:, :, :Dh]                                 # 1/sqrt(Dh) already folded into W_q/b_q
        k = qkv[:, :, Dh:2 * Dh]
        v = qkv[:, :, 2 * Dh:]

        # ---- scaled dot-product attention, softmax over keys ----
        s = jnp.einsum("hsd,htd->hst", q, k, preferred_element_type=jnp.float32)
        s = s - jnp.max(s, axis=-1, keepdims=True)
        p = jnp.exp(s)
        p = p * pl.reciprocal(jnp.sum(p, axis=-1, keepdims=True), approx=True)
        ctx = jnp.einsum("hst,htd->hsd", p, v, preferred_element_type=jnp.float32)

        # ---- output projection: sum over heads of ctx_h @ Wo_h ----
        attn = jnp.einsum("hsd,hde->hse", ctx, wo_ref[l],
                          preferred_element_type=jnp.float32)
        attn = jnp.sum(attn, axis=0) + bo_ref[l]           # (S, E)

        # ---- residual + LayerNorm1 (post-norm, PyTorch default) ----
        y = x + attn
        mu = jnp.mean(y, axis=-1, keepdims=True)
        var = jnp.mean((y - mu) ** 2, axis=-1, keepdims=True)
        y = (y - mu) * lax.rsqrt(var + LN_EPS) * g1_ref[l] + be1_ref[l]

        # ---- feed-forward (ReLU) ----
        h1 = jnp.dot(y, w1_ref[l], preferred_element_type=jnp.float32) + b1_ref[l]
        h1 = jnp.maximum(h1, 0.0)
        h2 = jnp.dot(h1, w2_ref[l], preferred_element_type=jnp.float32) + b2_ref[l]

        # ---- residual + LayerNorm2 ----
        z = y + h2
        mu2 = jnp.mean(z, axis=-1, keepdims=True)
        var2 = jnp.mean((z - mu2) ** 2, axis=-1, keepdims=True)
        x = (z - mu2) * lax.rsqrt(var2 + LN_EPS) * g2_ref[l] + be2_ref[l]

    o_ref[0] = x.astype(o_ref.dtype)


def _encoder_stack_call(x_bse, sp):
    """One pallas_call for the whole encoder stack. x_bse: (B, S, E)."""
    B, S, E = x_bse.shape

    def resident(arr):
        # Whole (L, ...) weight stack as a single block with a constant
        # index_map: the block index never changes across the grid, so the
        # weights are fetched to VMEM once and reused by every grid step.
        nd = arr.ndim
        return pl.BlockSpec(arr.shape, lambda b, _nd=nd: (0,) * _nd)

    weights = [sp[k] for k in _PARAM_ORDER]
    return pl.pallas_call(
        _encoder_stack_kernel,
        out_shape=jax.ShapeDtypeStruct((B, S, E), x_bse.dtype),
        grid=(B,),
        in_specs=[pl.BlockSpec((1, S, E), lambda b: (b, 0, 0))]
                 + [resident(w) for w in weights],
        out_specs=pl.BlockSpec((1, S, E), lambda b: (b, 0, 0)),
        compiler_params=pltpu.CompilerParams(
            dimension_semantics=("parallel",)),
    )(x_bse, *weights)


def custom_transformer_encoder(src_sbe, stacked_params, mask=None,
                               src_key_padding_mask=None):
    """Matches CustomTransformerEncoder.forward. src_sbe: (S, B, E)."""
    # TODO(synk): src_mask / src_key_padding_mask are not supported (the
    # reference forward path passes None); attention masking is unimplemented.
    assert mask is None and src_key_padding_mask is None
    x_bse = jnp.transpose(src_sbe, (1, 0, 2))   # one transpose in, one out, per forward
    out = _encoder_stack_call(x_bse, stacked_params)
    return jnp.transpose(out, (1, 0, 2))


# ---------------------------------------------------------------------------
# Host-side parameter plumbing (PyTorch orientation -> kernel layout).
# ---------------------------------------------------------------------------
def init_torch_layer_params(key, E, F):
    """Synthetic parameters for one nn.TransformerEncoderLayer, stored in
    PyTorch orientation: Linear weights are (out_features, in_features)."""
    ks = jax.random.split(key, 8)
    se = 1.0 / math.sqrt(E)
    sf = 1.0 / math.sqrt(F)
    return dict(
        in_proj_weight=jax.random.normal(ks[0], (3 * E, E), jnp.float32) * se,
        in_proj_bias=jax.random.normal(ks[1], (3 * E,), jnp.float32) * 0.02,
        out_proj_weight=jax.random.normal(ks[2], (E, E), jnp.float32) * se,
        out_proj_bias=jax.random.normal(ks[3], (E,), jnp.float32) * 0.02,
        linear1_weight=jax.random.normal(ks[4], (F, E), jnp.float32) * se,
        linear1_bias=jax.random.normal(ks[5], (F,), jnp.float32) * 0.02,
        linear2_weight=jax.random.normal(ks[6], (E, F), jnp.float32) * sf,
        linear2_bias=jax.random.normal(ks[7], (E,), jnp.float32) * 0.02,
        ln1_weight=jnp.ones((E,), jnp.float32),
        ln1_bias=jnp.zeros((E,), jnp.float32),
        ln2_weight=jnp.ones((E,), jnp.float32),
        ln2_bias=jnp.zeros((E,), jnp.float32),
    )


def stack_layer_params(layer_params, num_heads):
    """Convert per-layer PyTorch-oriented params into the stacked kernel layout:
    leading L axis, heads pre-split, x @ W layout, 1/sqrt(Dh) folded into Q."""
    def one(p):
        E = p["out_proj_weight"].shape[0]
        F = p["linear1_weight"].shape[0]
        H = num_heads
        Dh = E // H
        scale = 1.0 / math.sqrt(Dh)

        def per_head(w_torch):                 # torch (E, E) -> (H, E, Dh)
            return w_torch.T.reshape(E, H, Dh).transpose(1, 0, 2)

        wq, wk, wv = jnp.split(p["in_proj_weight"], 3, axis=0)
        bq, bk, bv = jnp.split(p["in_proj_bias"], 3)
        wqkv = jnp.concatenate(
            [per_head(wq) * scale, per_head(wk), per_head(wv)], axis=-1)
        bqkv = jnp.concatenate(
            [bq.reshape(H, 1, Dh) * scale,
             bk.reshape(H, 1, Dh),
             bv.reshape(H, 1, Dh)], axis=-1)
        return dict(
            wqkv=wqkv,                                       # (H, E, 3*Dh)
            bqkv=bqkv,                                       # (H, 1, 3*Dh)
            wo=p["out_proj_weight"].T.reshape(H, Dh, E),     # (H, Dh, E)
            bo=p["out_proj_bias"].reshape(1, E),
            w1=p["linear1_weight"].T,                        # (E, F)
            b1=p["linear1_bias"].reshape(1, F),
            w2=p["linear2_weight"].T,                        # (F, E)
            b2=p["linear2_bias"].reshape(1, E),
            g1=p["ln1_weight"].reshape(1, E),
            be1=p["ln1_bias"].reshape(1, E),
            g2=p["ln2_weight"].reshape(1, E),
            be2=p["ln2_bias"].reshape(1, E),
        )

    per_layer = [one(p) for p in layer_params]
    return {k: jnp.stack([d[k] for d in per_layer], axis=0)
            for k in _PARAM_ORDER}


def _reference_encoder(src_sbe, layer_params, num_heads):
    """Pure-JAX reference of the PyTorch module (validation only)."""
    def layer_norm(t, g, b):
        mu = jnp.mean(t, axis=-1, keepdims=True)
        var = jnp.mean((t - mu) ** 2, axis=-1, keepdims=True)
        return (t - mu) / jnp.sqrt(var + LN_EPS) * g + b

    x = jnp.transpose(src_sbe, (1, 0, 2))   # (B, S, E)
    B, S, E = x.shape
    H = num_heads
    Dh = E // H
    for p in layer_params:
        wq, wk, wv = jnp.split(p["in_proj_weight"], 3, axis=0)
        bq, bk, bv = jnp.split(p["in_proj_bias"], 3)
        q = x @ wq.T + bq
        k = x @ wk.T + bk
        v = x @ wv.T + bv

        def split(t):
            return t.reshape(B, S, H, Dh).transpose(0, 2, 1, 3)

        qh, kh, vh = split(q), split(k), split(v)
        s = jnp.einsum("bhsd,bhtd->bhst", qh, kh) / math.sqrt(Dh)
        a = jax.nn.softmax(s, axis=-1)
        ctx = jnp.einsum("bhst,bhtd->bhsd", a, vh)
        ctx = ctx.transpose(0, 2, 1, 3).reshape(B, S, E)
        attn = ctx @ p["out_proj_weight"].T + p["out_proj_bias"]
        y = layer_norm(x + attn, p["ln1_weight"], p["ln1_bias"])
        h = jnp.maximum(y @ p["linear1_weight"].T + p["linear1_bias"], 0.0)
        h = h @ p["linear2_weight"].T + p["linear2_bias"]
        x = layer_norm(y + h, p["ln2_weight"], p["ln2_bias"])
    return jnp.transpose(x, (1, 0, 2))


if __name__ == "__main__":
    S, B, E, F = 8, 2, 32, 64
    NUM_HEADS, NUM_LAYERS = 4, 2

    key = jax.random.PRNGKey(0)
    k_in, k_par = jax.random.split(key)
    src = jax.random.normal(k_in, (S, B, E), jnp.float32)     # (seq, batch, embed)

    layer_keys = jax.random.split(k_par, NUM_LAYERS)
    layer_params = [init_torch_layer_params(k, E, F) for k in layer_keys]
    stacked = stack_layer_params(layer_params, NUM_HEADS)

    out = jax.jit(custom_transformer_encoder)(src, stacked)
    out = jax.block_until_ready(out)

    assert out.shape == (S, B, E)
    assert bool(jnp.all(jnp.isfinite(out)))

    ref = _reference_encoder(src, layer_params, NUM_HEADS)
    err = float(jnp.max(jnp.abs(out - ref)))
    assert err < 5e-2, f"max abs err vs reference: {err}"

    print("KERNEL_OK")
</pallas_src>

<mosaic_0001>
module attributes {stable_mosaic.version = 11 : i64} {
  func.func @_encoder_stack_kernel(%arg0: i32, %arg1: memref<1x8x32xf32, #tpu.memory_space<vmem>>, %arg2: memref<2x4x32x24xf32, #tpu.memory_space<vmem>>, %arg3: memref<2x4x1x24xf32, #tpu.memory_space<vmem>>, %arg4: memref<2x4x8x32xf32, #tpu.memory_space<vmem>>, %arg5: memref<2x1x32xf32, #tpu.memory_space<vmem>>, %arg6: memref<2x32x64xf32, #tpu.memory_space<vmem>>, %arg7: memref<2x1x64xf32, #tpu.memory_space<vmem>>, %arg8: memref<2x64x32xf32, #tpu.memory_space<vmem>>, %arg9: memref<2x1x32xf32, #tpu.memory_space<vmem>>, %arg10: memref<2x1x32xf32, #tpu.memory_space<vmem>>, %arg11: memref<2x1x32xf32, #tpu.memory_space<vmem>>, %arg12: memref<2x1x32xf32, #tpu.memory_space<vmem>>, %arg13: memref<2x1x32xf32, #tpu.memory_space<vmem>>, %arg14: memref<1x8x32xf32, #tpu.memory_space<vmem>>) attributes {dimension_semantics = [#tpu.dimension_semantics<parallel>], iteration_bounds = array<i64: 2>, scalar_prefetch = 0 : i64, scratch_operands = 0 : i64, tpu.core_type = #tpu.core_type<tc>, window_params = [{transform_indices = @transform_0, window_bounds = array<i64: 1, 8, 32>}, {pipeline_mode = #tpu.pipeline_mode<synchronous>, transform_indices = @transform_1, window_bounds = array<i64: 2, 4, 32, 24>}, {pipeline_mode = #tpu.pipeline_mode<synchronous>, transform_indices = @transform_2, window_bounds = array<i64: 2, 4, 1, 24>}, {pipeline_mode = #tpu.pipeline_mode<synchronous>, transform_indices = @transform_3, window_bounds = array<i64: 2, 4, 8, 32>}, {pipeline_mode = #tpu.pipeline_mode<synchronous>, transform_indices = @transform_4, window_bounds = array<i64: 2, 1, 32>}, {pipeline_mode = #tpu.pipeline_mode<synchronous>, transform_indices = @transform_5, window_bounds = array<i64: 2, 32, 64>}, {pipeline_mode = #tpu.pipeline_mode<synchronous>, transform_indices = @transform_6, window_bounds = array<i64: 2, 1, 64>}, {pipeline_mode = #tpu.pipeline_mode<synchronous>, transform_indices = @transform_7, window_bounds = array<i64: 2, 64, 32>}, {pipeline_mode = #tpu.pipeline_mode<synchronous>, transform_indices = @transform_8, window_bounds = array<i64: 2, 1, 32>}, {pipeline_mode = #tpu.pipeline_mode<synchronous>, transform_indices = @transform_9, window_bounds = array<i64: 2, 1, 32>}, {pipeline_mode = #tpu.pipeline_mode<synchronous>, transform_indices = @transform_10, window_bounds = array<i64: 2, 1, 32>}, {pipeline_mode = #tpu.pipeline_mode<synchronous>, transform_indices = @transform_11, window_bounds = array<i64: 2, 1, 32>}, {pipeline_mode = #tpu.pipeline_mode<synchronous>, transform_indices = @transform_12, window_bounds = array<i64: 2, 1, 32>}, {transform_indices = @transform_13, window_bounds = array<i64: 1, 8, 32>}]} {
    %c0 = arith.constant 0 : index
    %c0_0 = arith.constant 0 : index
    %c0_1 = arith.constant 0 : index
    %0 = vector.load %arg1[%c0, %c0_0, %c0_1] : memref<1x8x32xf32, #tpu.memory_space<vmem>>, vector<1x8x32xf32>
    %1 = vector.shape_cast %0 : vector<1x8x32xf32> to vector<8x32xf32>
    %2 = vector.shape_cast %1 : vector<8x32xf32> to vector<1x8x32xf32>
    %3 = vector.broadcast %2 : vector<1x8x32xf32> to vector<4x8x32xf32>
    %c0_2 = arith.constant 0 : index
    %c0_3 = arith.constant 0 : index
    %c0_4 = arith.constant 0 : index
    %c0_5 = arith.constant 0 : index
    %4 = vector.load %arg2[%c0_2, %c0_3, %c0_4, %c0_5] : memref<2x4x32x24xf32, #tpu.memory_space<vmem>>, vector<1x4x32x24xf32>
    %5 = vector.shape_cast %4 : vector<1x4x32x24xf32> to vector<4x32x24xf32>
    "tpu.trace_start"() <{level = 10 : i32, message = "hse,hef->hsf"}> : () -> ()
    %cst = arith.constant dense<0.000000e+00> : vector<4x8x24xf32>
    %6 = tpu.matmul %3, %5, %cst {dimension_numbers = #tpu.dot_dimension_numbers<[2], [1], [1], [2], [0, 0, 0, 1, 1, 2], [0], [0]>} : vector<4x8x32xf32>, vector<4x32x24xf32>, vector<4x8x24xf32> -> vector<4x8x24xf32>
    "tpu.trace_stop"() : () -> ()
    %c0_6 = arith.constant 0 : index
    %c0_7 = arith.constant 0 : index
    %c0_8 = arith.constant 0 : index
    %c0_9 = arith.constant 0 : index
    %7 = vector.load %arg3[%c0_6, %c0_7, %c0_8, %c0_9] : memref<2x4x1x24xf32, #tpu.memory_space<vmem>>, vector<1x4x1x24xf32>
    %8 = vector.shape_cast %7 : vector<1x4x1x24xf32> to vector<4x1x24xf32>
    %9 = vector.broadcast %8 : vector<4x1x24xf32> to vector<4x8x24xf32>
    %10 = arith.addf %6, %9 : vector<4x8x24xf32>
    %11 = vector.extract_strided_slice %10 {offsets = [0, 0, 0], sizes = [4, 8, 8], strides = [1, 1, 1]} : vector<4x8x24xf32> to vector<4x8x8xf32>
    %12 = vector.extract_strided_slice %10 {offsets = [0, 0, 8], sizes = [4, 8, 8], strides = [1, 1, 1]} : vector<4x8x24xf32> to vector<4x8x8xf32>
    %13 = vector.extract_strided_slice %10 {offsets = [0, 0, 16], sizes = [4, 8, 8], strides = [1, 1, 1]} : vector<4x8x24xf32> to vector<4x8x8xf32>
    "tpu.trace_start"() <{level = 10 : i32, message = "hsd,htd->hst"}> : () -> ()
    %cst_10 = arith.constant dense<0.000000e+00> : vector<4x8x8xf32>
    %14 = tpu.matmul %11, %12, %cst_10 {dimension_numbers = #tpu.dot_dimension_numbers<[2], [2], [1], [1], [0, 0, 0, 1, 1, 1], [0], [0]>} : vector<4x8x8xf32>, vector<4x8x8xf32>, vector<4x8x8xf32> -> vector<4x8x8xf32>
    "tpu.trace_stop"() : () -> ()
    %cst_11 = arith.constant dense<0xFF800000> : vector<4x8xf32>
    %15 = vector.multi_reduction <maximumf>, %14, %cst_11 [2] : vector<4x8x8xf32> to vector<4x8xf32>
    %16 = vector.shape_cast %15 : vector<4x8xf32> to vector<4x8x1xf32>
    %17 = vector.broadcast %16 : vector<4x8x1xf32> to vector<4x8x8xf32>
    %18 = arith.subf %14, %17 : vector<4x8x8xf32>
    %19 = math.exp %18 : vector<4x8x8xf32>
    %cst_12 = arith.constant dense<0.000000e+00> : vector<4x8xf32>
    %20 = vector.multi_reduction <add>, %19, %cst_12 [2] : vector<4x8x8xf32> to vector<4x8xf32>
    %21 = vector.shape_cast %20 : vector<4x8xf32> to vector<4x8x1xf32>
    %22 = tpu.reciprocal %21 {approx = true} : vector<4x8x1xf32> -> vector<4x8x1xf32>
    %23 = vector.broadcast %22 : vector<4x8x1xf32> to vector<4x8x8xf32>
    %24 = arith.mulf %19, %23 : vector<4x8x8xf32>
    "tpu.trace_start"() <{level = 10 : i32, message = "hst,htd->hsd"}> : () -> ()
    %cst_13 = arith.constant dense<0.000000e+00> : vector<4x8x8xf32>
    %25 = tpu.matmul %24, %13, %cst_13 {dimension_numbers = #tpu.dot_dimension_numbers<[2], [1], [1], [2], [0, 0, 0, 1, 1, 2], [0], [0]>} : vector<4x8x8xf32>, vector<4x8x8xf32>, vector<4x8x8xf32> -> vector<4x8x8xf32>
    "tpu.trace_stop"() : () -> ()
    %c0_14 = arith.constant 0 : index
    %c0_15 = arith.constant 0 : index
    %c0_16 = arith.constant 0 : index
    %c0_17 = arith.constant 0 : index
    %26 = vector.load %arg4[%c0_14, %c0_15, %c0_16, %c0_17] : memref<2x4x8x32xf32, #tpu.memory_space<vmem>>, vector<1x4x8x32xf32>
    %27 = vector.shape_cast %26 : vector<1x4x8x32xf32> to vector<4x8x32xf32>
    "tpu.trace_start"() <{level = 10 : i32, message = "hsd,hde->hse"}> : () -> ()
    %cst_18 = arith.constant dense<0.000000e+00> : vector<4x8x32xf32>
    %28 = tpu.matmul %25, %27, %cst_18 {dimension_numbers = #tpu.dot_dimension_numbers<[2], [1], [1], [2], [0, 0, 0, 1, 1, 2], [0], [0]>} : vector<4x8x8xf32>, vector<4x8x32xf32>, vector<4x8x32xf32> -> vector<4x8x32xf32>
    "tpu.trace_stop"() : () -> ()
    %cst_19 = arith.constant dense<0.000000e+00> : vector<8x32xf32>
    %29 = vector.multi_reduction <add>, %28, %cst_19 [0] : vector<4x8x32xf32> to vector<8x32xf32>
    %c0_20 = arith.constant 0 : index
    %c0_21 = arith.constant 0 : index
    %c0_22 = arith.constant 0 : index
    %30 = vector.load %arg5[%c0_20, %c0_21, %c0_22] : memref<2x1x32xf32, #tpu.memory_space<vmem>>, vector<1x1x32xf32>
    %31 = vector.shape_cast %30 : vector<1x1x32xf32> to vector<1x32xf32>
    %32 = vector.broadcast %31 : vector<1x32xf32> to vector<8x32xf32>
    %33 = arith.addf %29, %32 : vector<8x32xf32>
    %34 = arith.addf %1, %33 : vector<8x32xf32>
    %cst_23 = arith.constant dense<0.000000e+00> : vector<8xf32>
    %35 = vector.multi_reduction <add>, %34, %cst_23 [1] : vector<8x32xf32> to vector<8xf32>
    %36 = vector.shape_cast %35 : vector<8xf32> to vector<8x1xf32>
    %cst_24 = arith.constant 3.200000e+01 : f32
    %37 = vector.broadcast %cst_24 : f32 to vector<8x1xf32>
    %38 = arith.divf %36, %37 : vector<8x1xf32>
    %39 = vector.broadcast %38 : vector<8x1xf32> to vector<8x32xf32>
    %40 = arith.subf %34, %39 : vector<8x32xf32>
    %41 = arith.mulf %40, %40 : vector<8x32xf32>
    %cst_25 = arith.constant dense<0.000000e+00> : vector<8xf32>
    %42 = vector.multi_reduction <add>, %41, %cst_25 [1] : vector<8x32xf32> to vector<8xf32>
    %43 = vector.shape_cast %42 : vector<8xf32> to vector<8x1xf32>
    %cst_26 = arith.constant 3.200000e+01 : f32
    %44 = vector.broadcast %cst_26 : f32 to vector<8x1xf32>
    %45 = arith.divf %43, %44 : vector<8x1xf32>
    %46 = vector.broadcast %38 : vector<8x1xf32> to vector<8x32xf32>
    %47 = arith.subf %34, %46 : vector<8x32xf32>
    %cst_27 = arith.constant 9.99999974E-6 : f32
    %48 = vector.broadcast %cst_27 : f32 to vector<8x1xf32>
    %49 = arith.addf %45, %48 : vector<8x1xf32>
    %50 = math.rsqrt %49 : vector<8x1xf32>
    %51 = vector.broadcast %50 : vector<8x1xf32> to vector<8x32xf32>
    %52 = arith.mulf %47, %51 : vector<8x32xf32>
    %c0_28 = arith.constant 0 : index
    %c0_29 = arith.constant 0 : index
    %c0_30 = arith.constant 0 : index
    %53 = vector.load %arg10[%c0_28, %c0_29, %c0_30] : memref<2x1x32xf32, #tpu.memory_space<vmem>>, vector<1x1x32xf32>
    %54 = vector.shape_cast %53 : vector<1x1x32xf32> to vector<1x32xf32>
    %55 = vector.broadcast %54 : vector<1x32xf32> to vector<8x32xf32>
    %56 = arith.mulf %52, %55 : vector<8x32xf32>
    %c0_31 = arith.constant 0 : index
    %c0_32 = arith.constant 0 : index
    %c0_33 = arith.constant 0 : index
    %57 = vector.load %arg11[%c0_31, %c0_32, %c0_33] : memref<2x1x32xf32, #tpu.memory_space<vmem>>, vector<1x1x32xf32>
    %58 = vector.shape_cast %57 : vector<1x1x32xf32> to vector<1x32xf32>
    %59 = vector.broadcast %58 : vector<1x32xf32> to vector<8x32xf32>
    %60 = arith.addf %56, %59 : vector<8x32xf32>
    %c0_34 = arith.constant 0 : index
    %c0_35 = arith.constant 0 : index
    %c0_36 = arith.constant 0 : index
    %61 = vector.load %arg6[%c0_34, %c0_35, %c0_36] : memref<2x32x64xf32, #tpu.memory_space<vmem>>, vector<1x32x64xf32>
    %62 = vector.shape_cast %61 : vector<1x32x64xf32> to vector<32x64xf32>
    %cst_37 = arith.constant dense<0.000000e+00> : vector<8x64xf32>
    %63 = tpu.matmul %60, %62, %cst_37 {dimension_numbers = #tpu.dot_dimension_numbers<[1], [0], [0], [1], [0, 0, 1, 1], [], []>} : vector<8x32xf32>, vector<32x64xf32>, vector<8x64xf32> -> vector<8x64xf32>
    %c0_38 = arith.constant 0 : index
    %c0_39 = arith.constant 0 : index
    %c0_40 = arith.constant 0 : index
    %64 = vector.load %arg7[%c0_38, %c0_39, %c0_40] : memref<2x1x64xf32, #tpu.memory_space<vmem>>, vector<1x1x64xf32>
    %65 = vector.shape_cast %64 : vector<1x1x64xf32> to vector<1x64xf32>
    %66 = vector.broadcast %65 : vector<1x64xf32> to vector<8x64xf32>
    %67 = arith.addf %63, %66 : vector<8x64xf32>
    %cst_41 = arith.constant 0.000000e+00 : f32
    %68 = vector.broadcast %cst_41 : f32 to vector<8x64xf32>
    %69 = arith.maximumf %67, %68 : vector<8x64xf32>
    %c0_42 = arith.constant 0 : index
    %c0_43 = arith.constant 0 : index
    %c0_44 = arith.constant 0 : index
    %70 = vector.load %arg8[%c0_42, %c0_43, %c0_44] : memref<2x64x32xf32, #tpu.memory_space<vmem>>, vector<1x64x32xf32>
    %71 = vector.shape_cast %70 : vector<1x64x32xf32> to vector<64x32xf32>
    %cst_45 = arith.constant dense<0.000000e+00> : vector<8x32xf32>
    %72 = tpu.matmul %69, %71, %cst_45 {dimension_numbers = #tpu.dot_dimension_numbers<[1], [0], [0], [1], [0, 0, 1, 1], [], []>} : vector<8x64xf32>, vector<64x32xf32>, vector<8x32xf32> -> vector<8x32xf32>
    %c0_46 = arith.constant 0 : index
    %c0_47 = arith.constant 0 : index
    %c0_48 = arith.constant 0 : index
    %73 = vector.load %arg9[%c0_46, %c0_47, %c0_48] : memref<2x1x32xf32, #tpu.memory_space<vmem>>, vector<1x1x32xf32>
    %74 = vector.shape_cast %73 : vector<1x1x32xf32> to vector<1x32xf32>
    %75 = vector.broadcast %74 : vector<1x32xf32> to vector<8x32xf32>
    %76 = arith.addf %72, %75 : vector<8x32xf32>
    %77 = arith.addf %60, %76 : vector<8x32xf32>
    %cst_49 = arith.constant dense<0.000000e+00> : vector<8xf32>
    %78 = vector.multi_reduction <add>, %77, %cst_49 [1] : vector<8x32xf32> to vector<8xf32>
    %79 = vector.shape_cast %78 : vector<8xf32> to vector<8x1xf32>
    %cst_50 = arith.constant 3.200000e+01 : f32
    %80 = vector.broadcast %cst_50 : f32 to vector<8x1xf32>
    %81 = arith.divf %79, %80 : vector<8x1xf32>
    %82 = vector.broadcast %81 : vector<8x1xf32> to vector<8x32xf32>
    %83 = arith.subf %77, %82 : vector<8x32xf32>
    %84 = arith.mulf %83, %83 : vector<8x32xf32>
    %cst_51 = arith.constant dense<0.000000e+00> : vector<8xf32>
    %85 = vector.multi_reduction <add>, %84, %cst_51 [1] : vector<8x32xf32> to vector<8xf32>
    %86 = vector.shape_cast %85 : vector<8xf32> to vector<8x1xf32>
    %cst_52 = arith.constant 3.200000e+01 : f32
    %87 = vector.broadcast %cst_52 : f32 to vector<8x1xf32>
    %88 = arith.divf %86, %87 : vector<8x1xf32>
    %89 = vector.broadcast %81 : vector<8x1xf32> to vector<8x32xf32>
    %90 = arith.subf %77, %89 : vector<8x32xf32>
    %cst_53 = arith.constant 9.99999974E-6 : f32
    %91 = vector.broadcast %cst_53 : f32 to vector<8x1xf32>
    %92 = arith.addf %88, %91 : vector<8x1xf32>
    %93 = math.rsqrt %92 : vector<8x1xf32>
    %94 = vector.broadcast %93 : vector<8x1xf32> to vector<8x32xf32>
    %95 = arith.mulf %90, %94 : vector<8x32xf32>
    %c0_54 = arith.constant 0 : index
    %c0_55 = arith.constant 0 : index
    %c0_56 = arith.constant 0 : index
    %96 = vector.load %arg12[%c0_54, %c0_55, %c0_56] : memref<2x1x32xf32, #tpu.memory_space<vmem>>, vector<1x1x32xf32>
    %97 = vector.shape_cast %96 : vector<1x1x32xf32> to vector<1x32xf32>
    %98 = vector.broadcast %97 : vector<1x32xf32> to vector<8x32xf32>
    %99 = arith.mulf %95, %98 : vector<8x32xf32>
    %c0_57 = arith.constant 0 : index
    %c0_58 = arith.constant 0 : index
    %c0_59 = arith.constant 0 : index
    %100 = vector.load %arg13[%c0_57, %c0_58, %c0_59] : memref<2x1x32xf32, #tpu.memory_space<vmem>>, vector<1x1x32xf32>
    %101 = vector.shape_cast %100 : vector<1x1x32xf32> to vector<1x32xf32>
    %102 = vector.broadcast %101 : vector<1x32xf32> to vector<8x32xf32>
    %103 = arith.addf %99, %102 : vector<8x32xf32>
    %104 = vector.shape_cast %103 : vector<8x32xf32> to vector<1x8x32xf32>
    %105 = vector.broadcast %104 : vector<1x8x32xf32> to vector<4x8x32xf32>
    %c1 = arith.constant 1 : index
    %c0_60 = arith.constant 0 : index
    %c0_61 = arith.constant 0 : index
    %c0_62 = arith.constant 0 : index
    %106 = vector.load %arg2[%c1, %c0_60, %c0_61, %c0_62] : memref<2x4x32x24xf32, #tpu.memory_space<vmem>>, vector<1x4x32x24xf32>
    %107 = vector.shape_cast %106 : vector<1x4x32x24xf32> to vector<4x32x24xf32>
    "tpu.trace_start"() <{level = 10 : i32, message = "hse,hef->hsf"}> : () -> ()
    %cst_63 = arith.constant dense<0.000000e+00> : vector<4x8x24xf32>
    %108 = tpu.matmul %105, %107, %cst_63 {dimension_numbers = #tpu.dot_dimension_numbers<[2], [1], [1], [2], [0, 0, 0, 1, 1, 2], [0], [0]>} : vector<4x8x32xf32>, vector<4x32x24xf32>, vector<4x8x24xf32> -> vector<4x8x24xf32>
    "tpu.trace_stop"() : () -> ()
    %c1_64 = arith.constant 1 : index
    %c0_65 = arith.constant 0 : index
    %c0_66 = arith.constant 0 : index
    %c0_67 = arith.constant 0 : index
    %109 = vector.load %arg3[%c1_64, %c0_65, %c0_66, %c0_67] : memref<2x4x1x24xf32, #tpu.memory_space<vmem>>, vector<1x4x1x24xf32>
    %110 = vector.shape_cast %109 : vector<1x4x1x24xf32> to vector<4x1x24xf32>
    %111 = vector.broadcast %110 : vector<4x1x24xf32> to vector<4x8x24xf32>
    %112 = arith.addf %108, %111 : vector<4x8x24xf32>
    %113 = vector.extract_strided_slice %112 {offsets = [0, 0, 0], sizes = [4, 8, 8], strides = [1, 1, 1]} : vector<4x8x24xf32> to vector<4x8x8xf32>
    %114 = vector.extract_strided_slice %112 {offsets = [0, 0, 8], sizes = [4, 8, 8], strides = [1, 1, 1]} : vector<4x8x24xf32> to vector<4x8x8xf32>
    %115 = vector.extract_strided_slice %112 {offsets = [0, 0, 16], sizes = [4, 8, 8], strides = [1, 1, 1]} : vector<4x8x24xf32> to vector<4x8x8xf32>
    "tpu.trace_start"() <{level = 10 : i32, message = "hsd,htd->hst"}> : () -> ()
    %cst_68 = arith.constant dense<0.000000e+00> : vector<4x8x8xf32>
    %116 = tpu.matmul %113, %114, %cst_68 {dimension_numbers = #tpu.dot_dimension_numbers<[2], [2], [1], [1], [0, 0, 0, 1, 1, 1], [0], [0]>} : vector<4x8x8xf32>, vector<4x8x8xf32>, vector<4x8x8xf32> -> vector<4x8x8xf32>
    "tpu.trace_stop"() : () -> ()
    %cst_69 = arith.constant dense<0xFF800000> : vector<4x8xf32>
    %117 = vector.multi_reduction <maximumf>, %116, %cst_69 [2] : vector<4x8x8xf32> to vector<4x8xf32>
    %118 = vector.shape_cast %117 : vector<4x8xf32> to vector<4x8x1xf32>
    %119 = vector.broadcast %118 : vector<4x8x1xf32> to vector<4x8x8xf32>
    %120 = arith.subf %116, %119 : vector<4x8x8xf32>
    %121 = math.exp %120 : vector<4x8x8xf32>
    %cst_70 = arith.constant dense<0.000000e+00> : vector<4x8xf32>
    %122 = vector.multi_reduction <add>, %121, %cst_70 [2] : vector<4x8x8xf32> to vector<4x8xf32>
    %123 = vector.shape_cast %122 : vector<4x8xf32> to vector<4x8x1xf32>
    %124 = tpu.reciprocal %123 {approx = true} : vector<4x8x1xf32> -> vector<4x8x1xf32>
    %125 = vector.broadcast %124 : vector<4x8x1xf32> to vector<4x8x8xf32>
    %126 = arith.mulf %121, %125 : vector<4x8x8xf32>
    "tpu.trace_start"() <{level = 10 : i32, message = "hst,htd->hsd"}> : () -> ()
    %cst_71 = arith.constant dense<0.000000e+00> : vector<4x8x8xf32>
    %127 = tpu.matmul %126, %115, %cst_71 {dimension_numbers = #tpu.dot_dimension_numbers<[2], [1], [1], [2], [0, 0, 0, 1, 1, 2], [0], [0]>} : vector<4x8x8xf32>, vector<4x8x8xf32>, vector<4x8x8xf32> -> vector<4x8x8xf32>
    "tpu.trace_stop"() : () -> ()
    %c1_72 = arith.constant 1 : index
    %c0_73 = arith.constant 0 : index
    %c0_74 = arith.constant 0 : index
    %c0_75 = arith.constant 0 : index
    %128 = vector.load %arg4[%c1_72, %c0_73, %c0_74, %c0_75] : memref<2x4x8x32xf32, #tpu.memory_space<vmem>>, vector<1x4x8x32xf32>
    %129 = vector.shape_cast %128 : vector<1x4x8x32xf32> to vector<4x8x32xf32>
    "tpu.trace_start"() <{level = 10 : i32, message = "hsd,hde->hse"}> : () -> ()
    %cst_76 = arith.constant dense<0.000000e+00> : vector<4x8x32xf32>
    %130 = tpu.matmul %127, %129, %cst_76 {dimension_numbers = #tpu.dot_dimension_numbers<[2], [1], [1], [2], [0, 0, 0, 1, 1, 2], [0], [0]>} : vector<4x8x8xf32>, vector<4x8x32xf32>, vector<4x8x32xf32> -> vector<4x8x32xf32>
    "tpu.trace_stop"() : () -> ()
    %cst_77 = arith.constant dense<0.000000e+00> : vector<8x32xf32>
    %131 = vector.multi_reduction <add>, %130, %cst_77 [0] : vector<4x8x32xf32> to vector<8x32xf32>
    %c1_78 = arith.constant 1 : index
    %c0_79 = arith.constant 0 : index
    %c0_80 = arith.constant 0 : index
    %132 = vector.load %arg5[%c1_78, %c0_79, %c0_80] : memref<2x1x32xf32, #tpu.memory_space<vmem>>, vector<1x1x32xf32>
    %133 = vector.shape_cast %132 : vector<1x1x32xf32> to vector<1x32xf32>
    %134 = vector.broadcast %133 : vector<1x32xf32> to vector<8x32xf32>
    %135 = arith.addf %131, %134 : vector<8x32xf32>
    %136 = arith.addf %103, %135 : vector<8x32xf32>
    %cst_81 = arith.constant dense<0.000000e+00> : vector<8xf32>
    %137 = vector.multi_reduction <add>, %136, %cst_81 [1] : vector<8x32xf32> to vector<8xf32>
    %138 = vector.shape_cast %137 : vector<8xf32> to vector<8x1xf32>
    %cst_82 = arith.constant 3.200000e+01 : f32
    %139 = vector.broadcast %cst_82 : f32 to vector<8x1xf32>
    %140 = arith.divf %138, %139 : vector<8x1xf32>
    %141 = vector.broadcast %140 : vector<8x1xf32> to vector<8x32xf32>
    %142 = arith.subf %136, %141 : vector<8x32xf32>
    %143 = arith.mulf %142, %142 : vector<8x32xf32>
    %cst_83 = arith.constant dense<0.000000e+00> : vector<8xf32>
    %144 = vector.multi_reduction <add>, %143, %cst_83 [1] : vector<8x32xf32> to vector<8xf32>
    %145 = vector.shape_cast %144 : vector<8xf32> to vector<8x1xf32>
    %cst_84 = arith.constant 3.200000e+01 : f32
    %146 = vector.broadcast %cst_84 : f32 to vector<8x1xf32>
    %147 = arith.divf %145, %146 : vector<8x1xf32>
    %148 = vector.broadcast %140 : vector<8x1xf32> to vector<8x32xf32>
    %149 = arith.subf %136, %148 : vector<8x32xf32>
    %cst_85 = arith.constant 9.99999974E-6 : f32
    %150 = vector.broadcast %cst_85 : f32 to vector<8x1xf32>
    %151 = arith.addf %147, %150 : vector<8x1xf32>
    %152 = math.rsqrt %151 : vector<8x1xf32>
    %153 = vector.broadcast %152 : vector<8x1xf32> to vector<8x32xf32>
    %154 = arith.mulf %149, %153 : vector<8x32xf32>
    %c1_86 = arith.constant 1 : index
    %c0_87 = arith.constant 0 : index
    %c0_88 = arith.constant 0 : index
    %155 = vector.load %arg10[%c1_86, %c0_87, %c0_88] : memref<2x1x32xf32, #tpu.memory_space<vmem>>, vector<1x1x32xf32>
    %156 = vector.shape_cast %155 : vector<1x1x32xf32> to vector<1x32xf32>
    %157 = vector.broadcast %156 : vector<1x32xf32> to vector<8x32xf32>
    %158 = arith.mulf %154, %157 : vector<8x32xf32>
    %c1_89 = arith.constant 1 : index
    %c0_90 = arith.constant 0 : index
    %c0_91 = arith.constant 0 : index
    %159 = vector.load %arg11[%c1_89, %c0_90, %c0_91] : memref<2x1x32xf32, #tpu.memory_space<vmem>>, vector<1x1x32xf32>
    %160 = vector.shape_cast %159 : vector<1x1x32xf32> to vector<1x32xf32>
    %161 = vector.broadcast %160 : vector<1x32xf32> to vector<8x32xf32>
    %162 = arith.addf %158, %161 : vector<8x32xf32>
    %c1_92 = arith.constant 1 : index
    %c0_93 = arith.constant 0 : index
    %c0_94 = arith.constant 0 : index
    %163 = vector.load %arg6[%c1_92, %c0_93, %c0_94] : memref<2x32x64xf32, #tpu.memory_space<vmem>>, vector<1x32x64xf32>
    %164 = vector.shape_cast %163 : vector<1x32x64xf32> to vector<32x64xf32>
    %cst_95 = arith.constant dense<0.000000e+00> : vector<8x64xf32>
    %165 = tpu.matmul %162, %164, %cst_95 {dimension_numbers = #tpu.dot_dimension_numbers<[1], [0], [0], [1], [0, 0, 1, 1], [], []>} : vector<8x32xf32>, vector<32x64xf32>, vector<8x64xf32> -> vector<8x64xf32>
    %c1_96 = arith.constant 1 : index
    %c0_97 = arith.constant 0 : index
    %c0_98 = arith.constant 0 : index
    %166 = vector.load %arg7[%c1_96, %c0_97, %c0_98] : memref<2x1x64xf32, #tpu.memory_space<vmem>>, vector<1x1x64xf32>
    %167 = vector.shape_cast %166 : vector<1x1x64xf32> to vector<1x64xf32>
    %168 = vector.broadcast %167 : vector<1x64xf32> to vector<8x64xf32>
    %169 = arith.addf %165, %168 : vector<8x64xf32>
    %cst_99 = arith.constant 0.000000e+00 : f32
    %170 = vector.broadcast %cst_99 : f32 to vector<8x64xf32>
    %171 = arith.maximumf %169, %170 : vector<8x64xf32>
    %c1_100 = arith.constant 1 : index
    %c0_101 = arith.constant 0 : index
    %c0_102 = arith.constant 0 : index
    %172 = vector.load %arg8[%c1_100, %c0_101, %c0_102] : memref<2x64x32xf32, #tpu.memory_space<vmem>>, vector<1x64x32xf32>
    %173 = vector.shape_cast %172 : vector<1x64x32xf32> to vector<64x32xf32>
    %cst_103 = arith.constant dense<0.000000e+00> : vector<8x32xf32>
    %174 = tpu.matmul %171, %173, %cst_103 {dimension_numbers = #tpu.dot_dimension_numbers<[1], [0], [0], [1], [0, 0, 1, 1], [], []>} : vector<8x64xf32>, vector<64x32xf32>, vector<8x32xf32> -> vector<8x32xf32>
    %c1_104 = arith.constant 1 : index
    %c0_105 = arith.constant 0 : index
    %c0_106 = arith.constant 0 : index
    %175 = vector.load %arg9[%c1_104, %c0_105, %c0_106] : memref<2x1x32xf32, #tpu.memory_space<vmem>>, vector<1x1x32xf32>
    %176 = vector.shape_cast %175 : vector<1x1x32xf32> to vector<1x32xf32>
    %177 = vector.broadcast %176 : vector<1x32xf32> to vector<8x32xf32>
    %178 = arith.addf %174, %177 : vector<8x32xf32>
    %179 = arith.addf %162, %178 : vector<8x32xf32>
    %cst_107 = arith.constant dense<0.000000e+00> : vector<8xf32>
    %180 = vector.multi_reduction <add>, %179, %cst_107 [1] : vector<8x32xf32> to vector<8xf32>
    %181 = vector.shape_cast %180 : vector<8xf32> to vector<8x1xf32>
    %cst_108 = arith.constant 3.200000e+01 : f32
    %182 = vector.broadcast %cst_108 : f32 to vector<8x1xf32>
    %183 = arith.divf %181, %182 : vector<8x1xf32>
    %184 = vector.broadcast %183 : vector<8x1xf32> to vector<8x32xf32>
    %185 = arith.subf %179, %184 : vector<8x32xf32>
    %186 = arith.mulf %185, %185 : vector<8x32xf32>
    %cst_109 = arith.constant dense<0.000000e+00> : vector<8xf32>
    %187 = vector.multi_reduction <add>, %186, %cst_109 [1] : vector<8x32xf32> to vector<8xf32>
    %188 = vector.shape_cast %187 : vector<8xf32> to vector<8x1xf32>
    %cst_110 = arith.constant 3.200000e+01 : f32
    %189 = vector.broadcast %cst_110 : f32 to vector<8x1xf32>
    %190 = arith.divf %188, %189 : vector<8x1xf32>
    %191 = vector.broadcast %183 : vector<8x1xf32> to vector<8x32xf32>
    %192 = arith.subf %179, %191 : vector<8x32xf32>
    %cst_111 = arith.constant 9.99999974E-6 : f32
    %193 = vector.broadcast %cst_111 : f32 to vector<8x1xf32>
    %194 = arith.addf %190, %193 : vector<8x1xf32>
    %195 = math.rsqrt %194 : vector<8x1xf32>
    %196 = vector.broadcast %195 : vector<8x1xf32> to vector<8x32xf32>
    %197 = arith.mulf %192, %196 : vector<8x32xf32>
    %c1_112 = arith.constant 1 : index
    %c0_113 = arith.constant 0 : index
    %c0_114 = arith.constant 0 : index
    %198 = vector.load %arg12[%c1_112, %c0_113, %c0_114] : memref<2x1x32xf32, #tpu.memory_space<vmem>>, vector<1x1x32xf32>
    %199 = vector.shape_cast %198 : vector<1x1x32xf32> to vector<1x32xf32>
    %200 = vector.broadcast %199 : vector<1x32xf32> to vector<8x32xf32>
    %201 = arith.mulf %197, %200 : vector<8x32xf32>
    %c1_115 = arith.constant 1 : index
    %c0_116 = arith.constant 0 : index
    %c0_117 = arith.constant 0 : index
    %202 = vector.load %arg13[%c1_115, %c0_116, %c0_117] : memref<2x1x32xf32, #tpu.memory_space<vmem>>, vector<1x1x32xf32>
    %203 = vector.shape_cast %202 : vector<1x1x32xf32> to vector<1x32xf32>
    %204 = vector.broadcast %203 : vector<1x32xf32> to vector<8x32xf32>
    %205 = arith.addf %201, %204 : vector<8x32xf32>
    %c0_118 = arith.constant 0 : index
    %c0_119 = arith.constant 0 : index
    %c0_120 = arith.constant 0 : index
    %206 = vector.load %arg14[%c0_118, %c0_119, %c0_120] : memref<1x8x32xf32, #tpu.memory_space<vmem>>, vector<1x8x32xf32>
    %207 = vector.shape_cast %206 : vector<1x8x32xf32> to vector<8x32xf32>
    %208 = vector.shape_cast %205 : vector<8x32xf32> to vector<1x8x32xf32>
    tpu.vector_store %arg14[%c0_118, %c0_119, %c0_120], %208 {strides = array<i32>} : memref<1x8x32xf32, #tpu.memory_space<vmem>>, vector<1x8x32xf32>,
    return
  }
  func.func @transform_0(%arg0: i32) -> (i32, i32, i32) {
    %c0_i32 = arith.constant 0 : i32
    %c0_i32_0 = arith.constant 0 : i32
    %c0_i32_1 = arith.constant 0 : i32
    return %arg0, %c0_i32, %c0_i32_0 : i32, i32, i32
  }
  func.func @transform_1(%arg0: i32) -> (i32, i32, i32, i32) {
    %c0_i32 = arith.constant 0 : i32
    %c0_i32_0 = arith.constant 0 : i32
    %c0_i32_1 = arith.constant 0 : i32
    %c0_i32_2 = arith.constant 0 : i32
    %c0_i32_3 = arith.constant 0 : i32
    return %c0_i32, %c0_i32_0, %c0_i32_1, %c0_i32_2 : i32, i32, i32, i32
  }
  func.func @transform_2(%arg0: i32) -> (i32, i32, i32, i32) {
    %c0_i32 = arith.constant 0 : i32
    %c0_i32_0 = arith.constant 0 : i32
    %c0_i32_1 = arith.constant 0 : i32
    %c0_i32_2 = arith.constant 0 : i32
    %c0_i32_3 = arith.constant 0 : i32
    return %c0_i32, %c0_i32_0, %c0_i32_1, %c0_i32_2 : i32, i32, i32, i32
  }
  func.func @transform_3(%arg0: i32) -> (i32, i32, i32, i32) {
    %c0_i32 = arith.constant 0 : i32
    %c0_i32_0 = arith.constant 0 : i32
    %c0_i32_1 = arith.constant 0 : i32
    %c0_i32_2 = arith.constant 0 : i32
    %c0_i32_3 = arith.constant 0 : i32
    return %c0_i32, %c0_i32_0, %c0_i32_1, %c0_i32_2 : i32, i32, i32, i32
  }
  func.func @transform_4(%arg0: i32) -> (i32, i32, i32) {
    %c0_i32 = arith.constant 0 : i32
    %c0_i32_0 = arith.constant 0 : i32
    %c0_i32_1 = arith.constant 0 : i32
    %c0_i32_2 = arith.constant 0 : i32
    return %c0_i32, %c0_i32_0, %c0_i32_1 : i32, i32, i32
  }
  func.func @transform_5(%arg0: i32) -> (i32, i32, i32) {
    %c0_i32 = arith.constant 0 : i32
    %c0_i32_0 = arith.constant 0 : i32
    %c0_i32_1 = arith.constant 0 : i32
    %c0_i32_2 = arith.constant 0 : i32
    return %c0_i32, %c0_i32_0, %c0_i32_1 : i32, i32, i32
  }
  func.func @transform_6(%arg0: i32) -> (i32, i32, i32) {
    %c0_i32 = arith.constant 0 : i32
    %c0_i32_0 = arith.constant 0 : i32
    %c0_i32_1 = arith.constant 0 : i32
    %c0_i32_2 = arith.constant 0 : i32
    return %c0_i32, %c0_i32_0, %c0_i32_1 : i32, i32, i32
  }
  func.func @transform_7(%arg0: i32) -> (i32, i32, i32) {
    %c0_i32 = arith.constant 0 : i32
    %c0_i32_0 = arith.constant 0 : i32
    %c0_i32_1 = arith.constant 0 : i32
    %c0_i32_2 = arith.constant 0 : i32
    return %c0_i32, %c0_i32_0, %c0_i32_1 : i32, i32, i32
  }
  func.func @transform_8(%arg0: i32) -> (i32, i32, i32) {
    %c0_i32 = arith.constant 0 : i32
    %c0_i32_0 = arith.constant 0 : i32
    %c0_i32_1 = arith.constant 0 : i32
    %c0_i32_2 = arith.constant 0 : i32
    return %c0_i32, %c0_i32_0, %c0_i32_1 : i32, i32, i32
  }
  func.func @transform_9(%arg0: i32) -> (i32, i32, i32) {
    %c0_i32 = arith.constant 0 : i32
    %c0_i32_0 = arith.constant 0 : i32
    %c0_i32_1 = arith.constant 0 : i32
    %c0_i32_2 = arith.constant 0 : i32
    return %c0_i32, %c0_i32_0, %c0_i32_1 : i32, i32, i32
  }
  func.func @transform_10(%arg0: i32) -> (i32, i32, i32) {
    %c0_i32 = arith.constant 0 : i32
    %c0_i32_0 = arith.constant 0 : i32
    %c0_i32_1 = arith.constant 0 : i32
    %c0_i32_2 = arith.constant 0 : i32
    return %c0_i32, %c0_i32_0, %c0_i32_1 : i32, i32, i32
  }
  func.func @transform_11(%arg0: i32) -> (i32, i32, i32) {
    %c0_i32 = arith.constant 0 : i32
    %c0_i32_0 = arith.constant 0 : i32
    %c0_i32_1 = arith.constant 0 : i32
    %c0_i32_2 = arith.constant 0 : i32
    return %c0_i32, %c0_i32_0, %c0_i32_1 : i32, i32, i32
  }
  func.func @transform_12(%arg0: i32) -> (i32, i32, i32) {
    %c0_i32 = arith.constant 0 : i32
    %c0_i32_0 = arith.constant 0 : i32
    %c0_i32_1 = arith.constant 0 : i32
    %c0_i32_2 = arith.constant 0 : i32
    return %c0_i32, %c0_i32_0, %c0_i32_1 : i32, i32, i32
  }
  func.func @transform_13(%arg0: i32) -> (i32, i32, i32) {
    %c0_i32 = arith.constant 0 : i32
    %c0_i32_0 = arith.constant 0 : i32
    %c0_i32_1 = arith.constant 0 : i32
    return %arg0, %c0_i32, %c0_i32_0 : i32, i32, i32
  }
}

</mosaic_0001>

<bundles_post_ra>
// kernel: custom_transformer_encoder.1
= control target key start
LH: loop header
LB: loop body
LE: loop exit
PB: predicated region body
PF: predicated region fallthrough
CT: control target
= control target key end

     0   :  { %s2009_s25 = smov 0   ;;  %s2409_s0 = inlined_call_operand.vmem [shape: f32[2,8,32], index: 0, kind: input, shape index: {}]   ;;  %s2410_s1 = inlined_call_operand.vmem [shape: f32[2,4,32,24], index: 1, kind: input, shape index: {}]   ;;  %s2411_s2 = inlined_call_operand.vmem [shape: f32[2,4,1,24], index: 2, kind: input, shape index: {}]   ;;  %s2412_s3 = inlined_call_operand.vmem [shape: f32[2,4,8,32], index: 3, kind: input, shape index: {}]   ;;  %s2413_s4 = inlined_call_operand.vmem [shape: f32[2,1,32], index: 4, kind: input, shape index: {}]   ;;  %s2414_s5 = inlined_call_operand.vmem [shape: f32[2,32,64], index: 5, kind: input, shape index: {}]   ;;  %s2415_s6 = inlined_call_operand.vmem [shape: f32[2,1,64], index: 6, kind: input, shape index: {}]   ;;  %s2416_s7 = inlined_call_operand.vmem [shape: f32[2,64,32], index: 7, kind: input, shape index: {}]   ;;  %s2417_s8 = inlined_call_operand.vmem [shape: f32[2,1,32], index: 8, kind: input, shape index: {}]   ;;  %s2418_s9 = inlined_call_operand.vmem [shape: f32[2,1,32], index: 9, kind: input, shape index: {}]   ;;  %s2419_s10 = inlined_call_operand.vmem [shape: f32[2,1,32], index: 10, kind: input, shape index: {}]   ;;  %s2420_s11 = inlined_call_operand.vmem [shape: f32[2,1,32], index: 11, kind: input, shape index: {}]   ;;  %s2421_s12 = inlined_call_operand.vmem [shape: f32[2,1,32], index: 12, kind: input, shape index: {}]   ;;  %s2422_s13 = inlined_call_operand.vmem [shape: f32[2,8,32], index: 13, kind: output, shape index: {}]  }
   0x1 LB: > { %s1737_s26 = sadd.s32 4294967295, %s1934_s25   ;;  %p1741_p0 = scmp.ge.s32.totalorder %s1934_s25, 1  ;;  %s1934_s25 = sphi %s2009_s25, %s23_s25  }
   0x2   : > { %p386_p1 = scmp.lt.s32.totalorder %s1934_s25, 3 }
   0x4   : > { %p387_p2 = pnand %p1741_p0, %p386_p1 }
   0x5   : > { %p428_p3 = scmp.lt.s32.totalorder (!%p387_p2), %s1737_s26, 1  ;;  %s1936_s19 = smov (!%p387_p2), 120  }
   0x6   : > { %390 = sbr.rel (%p387_p2) target bundleno = 3485 (0xd9d), region = 72  ;;  %s1937_s28 = smov (!%p387_p2), 112  }
   0xb   : > { %v440_v0 = vld [vmem:[%s2410_s1 + $0x18] sm:$0xff]  ;;  %v439_v3 = vld [vmem:[%s2410_s1 + $0x10] sm:$0xff]  ;;  %v438_v6 = vld [vmem:[%s2410_s1 + $0x8] sm:$0xff]  ;;  %s2424_s26 = smov (!%p428_p3, %s1737_s26), 1  ;;  %vm469_vm0 = vcmask 261120   ;;  %vm556_vm1 = vcmask 64512  }
   0xc   : > { %v448_v1 = vld [vmem:[%s2410_s1 + $0x58] sm:$0xff]  ;;  %485 = vmatpush.msra.mxu1 %v440_v0  ;;  %v447_v4 = vld [vmem:[%s2410_s1 + $0x50] sm:$0xff]  ;;  %v446_v7 = vld [vmem:[%s2410_s1 + $0x48] sm:$0xff]  ;;  %s1742_s17 = sshll.u32 %s2424_s26, 3  ;;  %vm1002_vm6 = vcmask 523264  }
   0xd   : > { %v452_v2 = vld [vmem:[%s2410_s1 + $0x78] sm:$0xff]  ;;  %525 = vmatpush.msra.mxu2 %v448_v1  ;;  %v451_v5 = vld [vmem:[%s2410_s1 + $0x70] sm:$0xff]  ;;  %v450_v8 = vld [vmem:[%s2410_s1 + $0x68] sm:$0xff]  ;;  %s431_s22 = scalar_lea.vmem %s2409_s0, %s1742_s17  ;;  %s435_s20 = scalar_lea.vmem %s2422_s13, %s1742_s17 }
   0xe   : > { %545 = vmatpush.msra.mxu3 %v452_v2  ;;  %486 = vmatpush.msra.mxu1 %v439_v3  ;;  %v437_v9 = vld [vmem:[%s2410_s1] sm:$0xff]  ;;  %v444_v12 = vld [vmem:[%s2410_s1 + $0x38] sm:$0xff]  ;;  %v443_v14 = vld [vmem:[%s2410_s1 + $0x30] sm:$0xff] }
   0xf   : > { %526 = vmatpush.msra.mxu2 %v447_v4  ;;  %v445_v10 = vld [vmem:[%s2410_s1 + $0x40] sm:$0xff]  ;;  %v442_v15 = vld [vmem:[%s2410_s1 + $0x28] sm:$0xff] }
  0x10   : > { %546 = vmatpush.msra.mxu3 %v451_v5  ;;  %487 = vmatpush.msra.mxu1 %v438_v6  ;;  %v449_v11 = vld [vmem:[%s2410_s1 + $0x60] sm:$0xff] }
  0x11   : > { %527 = vmatpush.msra.mxu2 %v446_v7  ;;  %v2064_v13 = vld [vmem:[%s431_s22] sm:$0xff] }
  0x12   : > { %547 = vmatpush.msra.mxu3 %v450_v8  ;;  %488 = vmatpush.msra.mxu1 %v437_v9  ;;  %v441_v16 = vld [vmem:[%s2410_s1 + $0x20] sm:$0xff] }
  0x13   : > { %528 = vmatpush.msra.mxu2 %v445_v10  ;;  %1744 = vmatmul.msk.f32.vlgmr.msra.gmra.mxu1 %vm469_vm0, %v2064_v13  ;;  %v1864_v17 = vld [vmem:[%s2411_s2] ss:$0 sm:$0xff]  ;;  %v1865_v20 = vld [vmem:[%s2411_s2 + $0x2] ss:$0 sm:$0xff]  ;;  %v1867_v21 = vld [vmem:[%s2411_s2 + $0x1] ss:$0 sm:$0xff] }
  0x14   : > { %548 = vmatpush.msra.mxu3 %v449_v11  ;;  %1746 = vmatmul.msk.f32.vlgmr.msra.gmra.mxu2 %vm469_vm0, %v2064_v13  ;;  %v1866_v26 = vld [vmem:[%s2411_s2 + $0x3] ss:$0 sm:$0xff] }
  0x15   : > { %1747 = vmatmul.msk.f32.vlgmr.msra.gmra.mxu3 %vm469_vm0, %v2064_v13  ;;  %505 = vmatpush.msrb.mxu1 %v444_v12 }
  0x17   : > { %506 = vmatpush.msrb.mxu1 %v443_v14 }
  0x19   : > { %507 = vmatpush.msrb.mxu1 %v442_v15 }
  0x1b   : > { %508 = vmatpush.msrb.mxu1 %v441_v16 }
  0x1c   : > { %1745 = vmatmul.msk.f32.vlgmr.msrb.gmra.mxu1 %vm469_vm0, %v2064_v13 }
  0x90   : > { %v490_v18 = vpop.f32.mrf.mxu1 }
  0x91   : > { %v491_v19 = vadd.f32 %v1864_v17, %v490_v18  ;;  %v811_v18 = vld [vmem:[%s2412_s3 + $0x8] sm:$0xff] }
  0x93   : > { %554 = vrot.lane.b32.xlu1 %v491_v19, %s1936_s19 }
  0x97   : > { %v530_v22 = vpop.f32.mrf.mxu2 }
  0x98   : > { %v531_v23 = vadd.f32 %v1865_v20, %v530_v22  ;;  %v550_v27 = vpop.f32.mrf.mxu3  ;;  %v813_v20 = vld [vmem:[%s2412_s3 + $0x18] sm:$0xff] }
  0x99   : > { %v510_v24 = vpop.f32.mrf.mxu1  ;;  %v551_v28 = vadd.f32 %v1866_v26, %v550_v27 }
  0x9a   : > { %v511_v25 = vadd.f32 %v1867_v21, %v510_v24  ;;  %609 = vrot.lane.b32.xlu0 %v531_v23, %s1936_s19  ;;  %v810_v21 = vld [vmem:[%s2412_s3] sm:$0xff] }
  0x9b   : > { %v1844_v42 = vpack.i.bf16 %v551_v28, %v531_v23 }
  0x9c   : > { %582 = vrot.lane.b32.xlu1 %v511_v25, %s1936_s19  ;;  %v1849_v41 = vpack.i.bf16 %v511_v25, %v491_v19 }
  0xa2   : > { %636 = vrot.lane.b32.xlu0 %v551_v28, %s1936_s19 }
 0x105   : > { %v555_v29 = vpop.permute.xlu1 %554 }
 0x106   : > { %1748 = vmatpush.xpose.msk.msra.mxu0 %vm556_vm1, %v555_v29 }
 0x109   : > { %1749 = vmatmul.msk.f32.vlgmr.msra.gmra.mxu0 %vm556_vm1, %v491_v19  ;;  %v812_v19 = vld [vmem:[%s2412_s3 + $0x10] sm:$0xff] }
 0x10c   : > { %v610_v30 = vpop.permute.xlu0 %609 }
 0x10d   : > { %1752 = vmatpush.xpose.msk.msrb.mxu2 %vm556_vm1, %v610_v30 }
 0x10e   : > { %v583_v31 = vpop.permute.xlu1 %582 }
 0x10f   : > { %1750 = vmatpush.xpose.msk.msra.mxu1 %vm556_vm1, %v583_v31 }
 0x110   : > { %1753 = vmatmul.msk.f32.vlgmr.msrb.gmra.mxu2 %vm556_vm1, %v531_v23 }
 0x112   : > { %1751 = vmatmul.msk.f32.vlgmr.msra.gmra.mxu1 %vm556_vm1, %v511_v25 }
 0x114   : > { %v637_v32 = vpop.permute.xlu0 %636 }
 0x115   : > { %1754 = vmatpush.xpose.msk.msrb.mxu3 %vm556_vm1, %v637_v32 }
 0x118   : > { %1755 = vmatmul.msk.f32.vlgmr.msrb.gmra.mxu3 %vm556_vm1, %v551_v28 }
 0x186   : > { %v578_v33 = vpop.f32.mrf.mxu0 }
 0x187   : > { %v662_v34 = vsel %vm556_vm1, %v578_v33, -inf }
 0x188   : > { %663 = vmax.xlane.f32.xlu0 %v662_v34 }
 0x18f   : > { %v605_v35 = vpop.f32.mrf.mxu1 }
 0x190   : > { %v665_v36 = vsel %vm556_vm1, %v605_v35, -inf }
 0x191   : > { %666 = vmax.xlane.f32.xlu1 %v665_v36 }
 0x193   : > { %v632_v37 = vpop.f32.mrf.mxu2 }
 0x194   : > { %v668_v38 = vsel %vm556_vm1, %v632_v37, -inf }
 0x195   : > { %669 = vmax.xlane.f32.xlu2 %v668_v38 }
 0x19b   : > { %v659_v39 = vpop.f32.mrf.mxu3 }
 0x19c   : > { %v671_v40 = vsel %vm556_vm1, %v659_v39, -inf }
 0x19d   : > { %672 = vmax.xlane.f32.xlu2 %v671_v40 }
 0x1aa   : > { %1850 = vrot.lane.b32.xlu1 %v1849_v41, %s1937_s28  ;;  %v1938_v41 = vmov 32.0  }
 0x1b5   : > { %1845 = vrot.lane.b32.xlu2 %v1844_v42, %s1937_s28 }
 0x1fb   : > { %v664_v50 = vpop.xlane.xlu0 %663 }
 0x1fc   : > { %v674_v55 = vsub.f32 %v578_v33, %v664_v50 }
 0x1fe   : > { %v678_v58 = vmul.f32 1.442695, %v674_v55  ;;  %v958_v55 = vld [vmem:[%s2414_s5] sm:$0xff] }
 0x204   : > { %v667_v43 = vpop.xlane.xlu1 %666 }
 0x205   : > { %v675_v44 = vsub.f32 %v605_v35, %v667_v43  ;;  %v1868_v35 = vld [vmem:[%s2413_s4] ss:$0 sm:$0xff] }
 0x207   : > { %v680_v45 = vmul.f32 1.442695, %v675_v44 }
 0x208   : > { %v670_v46 = vpop.xlane.xlu2 %669 }
 0x209   : > { %1886 = vpow2.f32 %v680_v45  ;;  %v676_v47 = vsub.f32 %v632_v37, %v670_v46 }
 0x20b   : > { %v682_v48 = vmul.f32 1.442695, %v676_v47 }
 0x20d   : > { %1888 = vpow2.f32 %v682_v48 }
 0x20f   : > { %v1887_v49 = vpop.eup %1886 }
 0x210   : > { %v673_v51 = vpop.xlane.xlu2 %672  ;;  %v689_v52 = vsel %vm556_vm1, %v1887_v49, 0.0 }
 0x211   : > { %v677_v53 = vsub.f32 %v659_v39, %v673_v51  ;;  %690 = vadd.xlane.f32.xlu0 %v689_v52  ;;  %v961_v52 = vld [vmem:[%s2414_s5 + $0x18] sm:$0xff] }
 0x213   : > { %v1889_v54 = vpop.eup %1888  ;;  %v684_v56 = vmul.f32 1.442695, %v677_v53  ;;  %v960_v53 = vld [vmem:[%s2414_s5 + $0x10] sm:$0xff] }
 0x214   : > { %v692_v57 = vsel %vm556_vm1, %v1889_v54, 0.0 }
 0x215   : > { %1890 = vpow2.f32 %v684_v56  ;;  %693 = vadd.xlane.f32.xlu2 %v692_v57  ;;  %v997_v56 = vld [vmem:[%s2416_s7 + $0x38] sm:$0xff]  ;;  %v996_v57 = vld [vmem:[%s2416_s7 + $0x30] sm:$0xff] }
 0x216   : > { %1892 = vpow2.f32 %v678_v58  ;;  %v995_v58 = vld [vmem:[%s2416_s7 + $0x28] sm:$0xff] }
 0x218   : > { %v1846_v59 = vpop.permute.xlu2 %1845 }
 0x219   : > { %v1848_v60 = vunpack.i.h.bf16 %v1846_v59  ;;  %v1847_v61 = vunpack.i.l.bf16 %v1846_v59 }
 0x21b   : > { %v1891_v62 = vpop.eup %1890  ;;  %779 = vmatpush.msra.mxu2 %v1847_v61  ;;  %805 = vmatpush.msra.mxu3 %v1848_v60  ;;  %v994_v61 = vld [vmem:[%s2416_s7 + $0x20] sm:$0xff] }
 0x21c   : > { %v1851_v63 = vpop.permute.xlu1 %1850  ;;  %v695_v0 = vsel %vm556_vm1, %v1891_v62, 0.0  ;;  %v1893_v3 = vpop.eup %1892 }
 0x21d   : > { %v1853_v1 = vunpack.i.h.bf16 %v1851_v63  ;;  %696 = vadd.xlane.f32.xlu2 %v695_v0  ;;  %v1852_v2 = vunpack.i.l.bf16 %v1851_v63  ;;  %v686_v4 = vsel %vm556_vm1, %v1893_v3, 0.0  ;;  %878 = vmatpush.msrb.mxu2 %v812_v19  ;;  %v993_v63 = vld [vmem:[%s2416_s7 + $0x18] sm:$0xff] }
 0x21e   : > { %901 = vmatpush.msrb.mxu3 %v813_v20  ;;  %v1872_v20 = vld [vmem:[%s2417_s8] ss:$0 sm:$0xff] }
 0x21f   : > { %727 = vmatpush.msrb.mxu0 %v1852_v2  ;;  %753 = vmatpush.msrb.mxu1 %v1853_v1 }
 0x221   : > { %855 = vmatpush.msra.mxu1 %v811_v18  ;;  %832 = vmatpush.msra.mxu0 %v810_v21 }
 0x225   : > { %687 = vadd.xlane.f32.xlu2 %v686_v4 }
 0x284   : > { %v691_v5 = vpop.xlane.xlu0 %690 }
 0x285   : > { %1894 = vrcp.f32 %v691_v5 }
 0x288   : > { %v694_v6 = vpop.xlane.xlu2 %693 }
 0x289   : > { %1896 = vrcp.f32 %v694_v6  ;;  %v1869_v6 = vld [vmem:[%s2418_s9] ss:$0 sm:$0xff] }
 0x28b   : > { %v1895_v7 = vpop.eup %1894 }
 0x28c   : > { %v703_v8 = vmul.f32 %v1895_v7, %v1887_v49 }
 0x28e   : > { %1757 = vmatmul.msk.f32.vlgmr.msrb.gmra.mxu1 %vm556_vm1, %v703_v8 }
 0x28f   : > { %v1897_v9 = vpop.eup %1896  ;;  %1014 = vmatpush.msrb.mxu1 %v997_v56 }
 0x290   : > { %v704_v10 = vmul.f32 %v1897_v9, %v1889_v54  ;;  %v697_v11 = vpop.xlane.xlu2 %696  ;;  %v959_v54 = vld [vmem:[%s2414_s5 + $0x8] sm:$0xff]  ;;  %v1870_v9 = vld [vmem:[%s2419_s10] ss:$0 sm:$0xff] }
 0x291   : > { %1898 = vrcp.f32 %v697_v11  ;;  %1015 = vmatpush.msrb.mxu1 %v996_v57 }
 0x292   : > { %1758 = vmatmul.msk.f32.vlgmr.msra.gmra.mxu2 %vm556_vm1, %v704_v10 }
 0x293   : > { %1016 = vmatpush.msrb.mxu1 %v995_v58  ;;  %v1874_v58 = vld [vmem:[%s2421_s12] ss:$0 sm:$0xff] }
 0x295   : > { %1017 = vmatpush.msrb.mxu1 %v994_v61  ;;  %v1876_v61 = vld [vmem:[%s2411_s2 + $0x4] ss:$0 sm:$0xff] }
 0x297   : > { %v1899_v12 = vpop.eup %1898  ;;  %1018 = vmatpush.msrb.mxu1 %v993_v63 }
 0x298   : > { %v705_v14 = vmul.f32 %v1899_v12, %v1891_v62  ;;  %v688_v15 = vpop.xlane.xlu2 %687  ;;  %v992_v12 = vld [vmem:[%s2416_s7 + $0x10] sm:$0xff] }
 0x299   : > { %1900 = vrcp.f32 %v688_v15  ;;  %1019 = vmatpush.msrb.mxu1 %v992_v12  ;;  %v990_v15 = vld [vmem:[%s2416_s7] sm:$0xff] }
 0x29a   : > { %1759 = vmatmul.msk.f32.vlgmr.msra.gmra.mxu3 %vm556_vm1, %v705_v14  ;;  %1902 = vrcp.f32 %v1938_v41  ;;  %v991_v14 = vld [vmem:[%s2416_s7 + $0x8] sm:$0xff]  ;;  %v1774_v41 = vld [vmem:[%s2410_s1 + $0xc0] sm:$0xff] }
 0x29b   : > { %1020 = vmatpush.msrb.mxu1 %v991_v14 }
 0x29d   : > { %1021 = vmatpush.msrb.mxu1 %v990_v15 }
 0x29f   : > { %v1901_v16 = vpop.eup %1900 }
 0x2a0   : > { %v702_v17 = vmul.f32 %v1901_v16, %v1893_v3  ;;  %v1903_v42 = vpop.eup %1902  ;;  %v1871_v16 = vld [vmem:[%s2415_s6] ss:$0 sm:$0xff] }
 0x2a1   : > { %v923_v43 = vmul.f32 32.0, %v1903_v42  ;;  %vm927_vm2 = vweird.f32 %v1903_v42 }
 0x2a2   : > { %1756 = vmatmul.msk.f32.vlgmr.msrb.gmra.mxu0 %vm556_vm1, %v702_v17 }
 0x2a3   : > { %v924_v44 = vsub.f32 1.0, %v923_v43  ;;  %981 = vmatpush.msrb.mxu0 %v961_v52  ;;  %v1780_v43 = vld [vmem:[%s2410_s1 + $0xf0] sm:$0xff] }
 0x2a5   : > { %v925_v45 = vmul.f32 %v1903_v42, %v924_v44  ;;  %982 = vmatpush.msrb.mxu0 %v960_v53 }
 0x2a7   : > { %v926_v46 = vadd.f32 %v1903_v42, %v925_v45  ;;  %983 = vmatpush.msrb.mxu0 %v959_v54  ;;  %v1779_v45 = vld [vmem:[%s2410_s1 + $0xe8] sm:$0xff] }
 0x2a9   : > { %v2146_v47 = vsel %vm927_vm2, %v1903_v42, %v926_v46  ;;  %984 = vmatpush.msrb.mxu0 %v958_v55  ;;  %v1781_v42 = vld [vmem:[%s2410_s1 + $0xf8] sm:$0xff]  ;;  %v1873_v55 = vld [vmem:[%s2420_s11] ss:$0 sm:$0xff] }
 0x30b   : > { %v755_v22 = vpop.f32.mrf.mxu1 }
 0x30c   : > { %1761 = vmatmul.msk.f32.vlgmr.msra.gmra.mxu1 %vm556_vm1, %v755_v22 }
 0x315   : > { %v781_v23 = vpop.f32.mrf.mxu2 }
 0x316   : > { %1762 = vmatmul.msk.f32.vlgmr.msrb.gmra.mxu2 %vm556_vm1, %v781_v23 }
 0x31d   : > { %v807_v24 = vpop.f32.mrf.mxu3 }
 0x31e   : > { %1763 = vmatmul.msk.f32.vlgmr.msrb.gmra.mxu3 %vm556_vm1, %v807_v24 }
 0x31f   : > { %v729_v25 = vpop.f32.mrf.mxu0 }
 0x320   : > { %1760 = vmatmul.msk.f32.vlgmr.msra.gmra.mxu0 %vm556_vm1, %v729_v25 }
 0x389   : > { %v857_v26 = vpop.f32.mrf.mxu1 }
 0x38a   : > { %v907_v29 = vsel %vm469_vm0, %v857_v26, 0.0 }
 0x399   : > { %v880_v27 = vpop.f32.mrf.mxu2 }
 0x39a   : > { %v909_v32 = vsel %vm469_vm0, %v880_v27, 0.0 }
 0x39d   : > { %v834_v28 = vpop.f32.mrf.mxu0 }
 0x39e   : > { %v906_v30 = vsel %vm469_vm0, %v834_v28, 0.0 }
 0x39f   : > { %v908_v31 = vadd.f32 %v907_v29, %v906_v30  ;;  %v1769_v30 = vld [vmem:[%s2410_s1 + $0x98] sm:$0xff] }
 0x3a0   : > { %1108 = vmatpush.msra.mxu2 %v1769_v30 }
 0x3a1   : > { %v903_v33 = vpop.f32.mrf.mxu3  ;;  %v910_v34 = vadd.f32 %v909_v32, %v908_v31  ;;  %v1773_v31 = vld [vmem:[%s2410_s1 + $0xb8] sm:$0xff] }
 0x3a2   : > { %v911_v36 = vsel %vm469_vm0, %v903_v33, 0.0  ;;  %v1777_v32 = vld [vmem:[%s2410_s1 + $0xd8] sm:$0xff]  ;;  %1128 = vmatpush.msra.mxu3 %v1773_v31  ;;  %v1768_v33 = vld [vmem:[%s2410_s1 + $0x90] sm:$0xff] }
 0x3a3   : > { %v912_v37 = vadd.f32 %v911_v36, %v910_v34  ;;  %1148 = vmatpush.msra.mxu0 %v1777_v32  ;;  %v1772_v34 = vld [vmem:[%s2410_s1 + $0xb0] sm:$0xff]  ;;  %1109 = vmatpush.msra.mxu2 %v1768_v33  ;;  %v1767_v36 = vld [vmem:[%s2410_s1 + $0x88] sm:$0xff] }
 0x3a4   : > { %1129 = vmatpush.msra.mxu3 %v1772_v34 }
 0x3a5   : > { %v917_v38 = vadd.f32 %v1868_v35, %v912_v37  ;;  %v1776_v35 = vld [vmem:[%s2410_s1 + $0xd0] sm:$0xff]  ;;  %v1771_v37 = vld [vmem:[%s2410_s1 + $0xa8] sm:$0xff]  ;;  %1110 = vmatpush.msra.mxu2 %v1767_v36 }
 0x3a6   : > { %1149 = vmatpush.msra.mxu0 %v1776_v35  ;;  %1130 = vmatpush.msra.mxu3 %v1771_v37 }
 0x3a7   : > { %v918_v39 = vadd.f32 %v917_v38, %v2064_v13  ;;  %v1775_v38 = vld [vmem:[%s2410_s1 + $0xc8] sm:$0xff] }
 0x3a8   : > { %1150 = vmatpush.msra.mxu0 %v1775_v38 }
 0x3a9   : > { %v919_v40 = vsel %vm469_vm0, %v918_v39, 0.0 }
 0x3aa   : > { %920 = vadd.xlane.f32.xlu0 %v919_v40  ;;  %v1770_v40 = vld [vmem:[%s2410_s1 + $0xa0] sm:$0xff]  ;;  %1151 = vmatpush.msra.mxu0 %v1774_v41 }
 0x3ab   : > { %1131 = vmatpush.msra.mxu3 %v1770_v40 }
 0x41d   : > { %v921_v48 = vpop.xlane.xlu0 %920 }
 0x41e   : > { %v929_v49 = vmul.f32 %v2146_v47, %v921_v48  ;;  %v1778_v48 = vld [vmem:[%s2410_s1 + $0xe0] sm:$0xff] }
 0x420   : > { %v930_v50 = vsub.f32 %v918_v39, %v929_v49  ;;  %v1766_v39 = vld [vmem:[%s2410_s1 + $0x80] sm:$0xff] }
 0x421   : > { %1111 = vmatpush.msra.mxu2 %v1766_v39 }
 0x422   : > { %v931_v51 = vmul.f32 %v930_v50, %v930_v50 }
 0x423   : > { %1168 = vmatpush.msrb.mxu2 %v1781_v42 }
 0x424   : > { %v932_v13 = vsel %vm469_vm0, %v931_v51, 0.0 }
 0x425   : > { %933 = vadd.xlane.f32.xlu0 %v932_v13  ;;  %1169 = vmatpush.msrb.mxu2 %v1780_v43 }
 0x427   : > { %1170 = vmatpush.msrb.mxu2 %v1779_v45 }
 0x429   : > { %1171 = vmatpush.msrb.mxu2 %v1778_v48 }
 0x498   : > { %v934_v59 = vpop.xlane.xlu0 %933 }
 0x499   : > { %v935_v60 = vmul.f32 %v934_v59, %v2146_v47 }
 0x49b   : > { %v936_v62 = vadd.f32 1e-05, %v935_v60 }
 0x49d   : > { %1904 = vrsqrt.f32 %v936_v62  ;;  %vm943_vm4 = vweird.f32 %v936_v62 }
 0x4a3   : > { %v1905_v0 = vpop.eup %1904 }
 0x4a4   : > { %v938_v1 = vmul.f32 %v1905_v0, %v936_v62  ;;  %vm944_vm3 = vweird.f32 %v1905_v0 }
 0x4a5   : > { %vm945_vm5 = vmor %vm943_vm4, %vm944_vm3 }
 0x4a6   : > { %v939_v2 = vmul.f32 %v1905_v0, %v938_v1  ;;  %v1878_v1 = vld [vmem:[%s2411_s2 + $0x7] ss:$0 sm:$0xff] }
 0x4a8   : > { %v940_v3 = vmul.f32 0.5, %v939_v2 }
 0x4aa   : > { %v941_v4 = vsub.f32 1.5, %v940_v3 }
 0x4ac   : > { %v942_v5 = vmul.f32 %v1905_v0, %v941_v4 }
 0x4ae   : > { %v946_v7 = vsel %vm945_vm5, %v1905_v0, %v942_v5  ;;  %v1877_v0 = vld [vmem:[%s2411_s2 + $0x5] ss:$0 sm:$0xff] }
 0x4af   : > { %v947_v8 = vmul.f32 %v946_v7, %v930_v50 }
 0x4b1   : > { %v952_v10 = vmul.f32 %v1869_v6, %v947_v8  ;;  %v1875_v6 = vld [vmem:[%s2411_s2 + $0x6] ss:$0 sm:$0xff] }
 0x4b3   : > { %v957_v11 = vadd.f32 %v1870_v9, %v952_v10 }
 0x4b5   : > { %1764 = vmatmul.msk.f32.vlgmr.msrb.gmra.mxu0 %vm469_vm0, %v957_v11 }
 0x532   : > { %v986_v17 = vpop.f32.mrf.mxu0 }
 0x533   : > { %v987_v18 = vadd.f32 %v1871_v16, %v986_v17 }
 0x535   : > { %v989_v19 = vmax.f32 %v987_v18, 0.0 }
 0x537   : > { %1765 = vmatmul.msk.f32.vlgmr.msrb.gmra.mxu1 %vm1002_vm6, %v989_v19 }
 0x5b4   : > { %v1023_v21 = vpop.f32.mrf.mxu1 }
 0x5b5   : > { %v1024_v22 = vadd.f32 %v1872_v20, %v1023_v21 }
 0x5b7   : > { %v1026_v23 = vadd.f32 %v1024_v22, %v957_v11 }
 0x5b9   : > { %v1027_v24 = vsel %vm469_vm0, %v1026_v23, 0.0 }
 0x5ba   : > { %1028 = vadd.xlane.f32.xlu0 %v1027_v24 }
 0x62d   : > { %v1029_v25 = vpop.xlane.xlu0 %1028 }
 0x62e   : > { %v1030_v26 = vmul.f32 %v1029_v25, %v2146_v47 }
 0x630   : > { %v1031_v27 = vsub.f32 %v1026_v23, %v1030_v26 }
 0x632   : > { %v1032_v28 = vmul.f32 %v1031_v27, %v1031_v27 }
 0x634   : > { %v1033_v29 = vsel %vm469_vm0, %v1032_v28, 0.0 }
 0x635   : > { %1034 = vadd.xlane.f32.xlu1 %v1033_v29 }
 0x6a8   : > { %v1035_v44 = vpop.xlane.xlu1 %1034 }
 0x6a9   : > { %v1036_v46 = vmul.f32 %v1035_v44, %v2146_v47 }
 0x6ab   : > { %v1037_v49 = vadd.f32 1e-05, %v1036_v46 }
 0x6ad   : > { %1906 = vrsqrt.f32 %v1037_v49  ;;  %vm1044_vm8 = vweird.f32 %v1037_v49 }
 0x6b3   : > { %v1907_v50 = vpop.eup %1906 }
 0x6b4   : > { %v1039_v51 = vmul.f32 %v1907_v50, %v1037_v49  ;;  %vm1045_vm7 = vweird.f32 %v1907_v50 }
 0x6b5   : > { %vm1046_vm9 = vmor %vm1044_vm8, %vm1045_vm7 }
 0x6b6   : > { %v1040_v13 = vmul.f32 %v1907_v50, %v1039_v51 }
 0x6b8   : > { %v1041_v52 = vmul.f32 0.5, %v1040_v13 }
 0x6ba   : > { %v1042_v53 = vsub.f32 1.5, %v1041_v52 }
 0x6bc   : > { %v1043_v54 = vmul.f32 %v1907_v50, %v1042_v53 }
 0x6be   : > { %v1047_v56 = vsel %vm1046_vm9, %v1907_v50, %v1043_v54 }
 0x6bf   : > { %v1048_v57 = vmul.f32 %v1047_v56, %v1031_v27 }
 0x6c1   : > { %v1053_v59 = vmul.f32 %v1873_v55, %v1048_v57 }
 0x6c3   : > { %v2259_v60 = vadd.f32 %v1874_v58, %v1053_v59 }
 0x6c5   : > { %1786 = vmatmul.msk.f32.vlgmr.msra.gmra.mxu2 %vm469_vm0, %v2259_v60  ;;  %1787 = vmatmul.msk.f32.vlgmr.msra.gmra.mxu3 %vm469_vm0, %v2259_v60 }
 0x6c6   : > { %1788 = vmatmul.msk.f32.vlgmr.msra.gmra.mxu0 %vm469_vm0, %v2259_v60 }
 0x6cd   : > { %1789 = vmatmul.msk.f32.vlgmr.msrb.gmra.mxu2 %vm469_vm0, %v2259_v60 }
 0x743   : > { %v1153_v7 = vpop.f32.mrf.mxu0 }
 0x744   : > { %v1154_v8 = vadd.f32 %v1875_v6, %v1153_v7 }
 0x748   : > { %v1113_v62 = vpop.f32.mrf.mxu2  ;;  %v1133_v2 = vpop.f32.mrf.mxu3 }
 0x749   : > { %v2272_v63 = vadd.f32 %v1876_v61, %v1113_v62  ;;  %v1134_v4 = vadd.f32 %v1877_v0, %v1133_v2  ;;  %v1804_v0 = vld [vmem:[%s2412_s3 + $0x30] sm:$0xff] }
 0x74b   : > { %1177 = vrot.lane.b32.xlu0 %v2272_v63, %s1936_s19  ;;  %v1859_v42 = vpack.i.bf16 %v1154_v8, %v1134_v4 }
 0x750   : > { %v1173_v3 = vpop.f32.mrf.mxu2 }
 0x751   : > { %v1174_v5 = vadd.f32 %v1878_v1, %v1173_v3  ;;  %v1802_v3 = vld [vmem:[%s2412_s3 + $0x20] sm:$0xff] }
 0x753   : > { %1258 = vrot.lane.b32.xlu2 %v1174_v5, %s1936_s19  ;;  %1204 = vrot.lane.b32.xlu0 %v1134_v4, %s1936_s19  ;;  %v1854_v43 = vpack.i.bf16 %v1174_v5, %v2272_v63 }
 0x75b   : > { %1231 = vrot.lane.b32.xlu0 %v1154_v8, %s1936_s19 }
 0x7ad   : > { %v1259_v9 = vpop.permute.xlu2 %1258 }
 0x7ae   : > { %1796 = vmatpush.xpose.msk.msra.mxu2 %vm556_vm1, %v1259_v9 }
 0x7b1   : > { %1797 = vmatmul.msk.f32.vlgmr.msra.gmra.mxu2 %vm556_vm1, %v1174_v5 }
 0x7bd   : > { %v1178_v10 = vpop.permute.xlu0 %1177 }
 0x7be   : > { %1790 = vmatpush.xpose.msk.msrb.mxu3 %vm556_vm1, %v1178_v10 }
 0x7c1   : > { %1791 = vmatmul.msk.f32.vlgmr.msrb.gmra.mxu3 %vm556_vm1, %v2272_v63  ;;  %v1803_v63 = vld [vmem:[%s2412_s3 + $0x28] sm:$0xff] }
 0x7c5   : > { %v1205_v11 = vpop.permute.xlu0 %1204 }
 0x7c6   : > { %1792 = vmatpush.xpose.msk.msrb.mxu0 %vm556_vm1, %v1205_v11 }
 0x7c9   : > { %1793 = vmatmul.msk.f32.vlgmr.msrb.gmra.mxu0 %vm556_vm1, %v1134_v4  ;;  %v1805_v4 = vld [vmem:[%s2412_s3 + $0x38] sm:$0xff] }
 0x7cd   : > { %v1232_v12 = vpop.permute.xlu0 %1231 }
 0x7ce   : > { %1794 = vmatpush.xpose.msk.msra.mxu1 %vm556_vm1, %v1232_v12 }
 0x7d1   : > { %1795 = vmatmul.msk.f32.vlgmr.msra.gmra.mxu1 %vm556_vm1, %v1154_v8 }
 0x834   : > { %v1281_v20 = vpop.f32.mrf.mxu2 }
 0x835   : > { %v1293_v21 = vsel %vm556_vm1, %v1281_v20, -inf }
 0x844   : > { %v1200_v14 = vpop.f32.mrf.mxu3 }
 0x845   : > { %v1284_v15 = vsel %vm556_vm1, %v1200_v14, -inf }
 0x846   : > { %1285 = vmax.xlane.f32.xlu2 %v1284_v15  ;;  %v1227_v16 = vpop.f32.mrf.mxu0 }
 0x847   : > { %v1287_v17 = vsel %vm556_vm1, %v1227_v16, -inf }
 0x848   : > { %1288 = vmax.xlane.f32.xlu0 %v1287_v17  ;;  %v1879_v17 = vld [vmem:[%s2413_s4 + $0x1] ss:$0 sm:$0xff] }
 0x84e   : > { %v1254_v18 = vpop.f32.mrf.mxu1 }
 0x84f   : > { %v1290_v19 = vsel %vm556_vm1, %v1254_v18, -inf }
 0x850   : > { %1291 = vmax.xlane.f32.xlu1 %v1290_v19 }
 0x858   : > { %1294 = vmax.xlane.f32.xlu1 %v1293_v21 }
 0x8b9   : > { %v1286_v22 = vpop.xlane.xlu2 %1285 }
 0x8ba   : > { %v1296_v23 = vsub.f32 %v1200_v14, %v1286_v22 }
 0x8bb   : > { %v1289_v24 = vpop.xlane.xlu0 %1288 }
 0x8bc   : > { %v1300_v25 = vmul.f32 1.442695, %v1296_v23  ;;  %v1297_v26 = vsub.f32 %v1227_v16, %v1289_v24 }
 0x8be   : > { %1908 = vpow2.f32 %v1300_v25  ;;  %v1302_v27 = vmul.f32 1.442695, %v1297_v26 }
 0x8c0   : > { %1910 = vpow2.f32 %v1302_v27 }
 0x8c3   : > { %v1292_v28 = vpop.xlane.xlu1 %1291 }
 0x8c4   : > { %v1909_v29 = vpop.eup %1908  ;;  %v1298_v30 = vsub.f32 %v1254_v18, %v1292_v28  ;;  %v1816_v28 = vld [vmem:[%s2414_s5 + $0x38] sm:$0xff] }
 0x8c5   : > { %v1308_v31 = vsel %vm556_vm1, %v1909_v29, 0.0 }
 0x8c6   : > { %v1911_v32 = vpop.eup %1910  ;;  %v1304_v33 = vmul.f32 1.442695, %v1298_v30  ;;  %1309 = vadd.xlane.f32.xlu1 %v1308_v31  ;;  %v1813_v30 = vld [vmem:[%s2414_s5 + $0x20] sm:$0xff]  ;;  %v1826_v31 = vld [vmem:[%s2416_s7 + $0x78] sm:$0xff] }
 0x8c7   : > { %v1311_v34 = vsel %vm556_vm1, %v1911_v32, 0.0 }
 0x8c8   : > { %1912 = vpow2.f32 %v1304_v33  ;;  %1312 = vadd.xlane.f32.xlu2 %v1311_v34  ;;  %v1824_v33 = vld [vmem:[%s2416_s7 + $0x68] sm:$0xff] }
 0x8cb   : > { %v1295_v35 = vpop.xlane.xlu1 %1294 }
 0x8cc   : > { %v1299_v36 = vsub.f32 %v1281_v20, %v1295_v35 }
 0x8ce   : > { %v1913_v37 = vpop.eup %1912  ;;  %v1306_v38 = vmul.f32 1.442695, %v1299_v36  ;;  %v1823_v36 = vld [vmem:[%s2416_s7 + $0x60] sm:$0xff] }
 0x8cf   : > { %v1314_v39 = vsel %vm556_vm1, %v1913_v37, 0.0 }
 0x8d0   : > { %1914 = vpow2.f32 %v1306_v38  ;;  %1315 = vadd.xlane.f32.xlu0 %v1314_v39  ;;  %v1822_v38 = vld [vmem:[%s2416_s7 + $0x58] sm:$0xff] }
 0x8d6   : > { %v1915_v40 = vpop.eup %1914 }
 0x8d7   : > { %v1317_v41 = vsel %vm556_vm1, %v1915_v40, 0.0 }
 0x8d8   : > { %1318 = vadd.xlane.f32.xlu1 %v1317_v41 }
 0x8e0   : > { %1860 = vrot.lane.b32.xlu2 %v1859_v42, %s1937_s28 }
 0x8f1   : > { %1855 = vrot.lane.b32.xlu1 %v1854_v43, %s1937_s28 }
 0x939   : > { %v1310_v53 = vpop.xlane.xlu1 %1309 }
 0x93b   : > { %v1313_v44 = vpop.xlane.xlu2 %1312 }
 0x93c   : > { %1916 = vrcp.f32 %v1313_v44 }
 0x942   : > { %v1917_v45 = vpop.eup %1916 }
 0x943   : > { %v1861_v46 = vpop.permute.xlu2 %1860  ;;  %v1316_v48 = vpop.xlane.xlu0 %1315  ;;  %v1325_v51 = vmul.f32 %v1917_v45, %v1911_v32  ;;  %v1825_v32 = vld [vmem:[%s2416_s7 + $0x70] sm:$0xff]  ;;  %v1880_v45 = vld [vmem:[%s2418_s9 + $0x1] ss:$0 sm:$0xff] }
 0x944   : > { %v1863_v49 = vunpack.i.h.bf16 %v1861_v46  ;;  %v1862_v50 = vunpack.i.l.bf16 %v1861_v46  ;;  %1918 = vrcp.f32 %v1316_v48 }
 0x945   : > { %1920 = vrcp.f32 %v1310_v53  ;;  %v1819_v53 = vld [vmem:[%s2416_s7 + $0x40] sm:$0xff] }
 0x946   : > { %1375 = vmatpush.msra.mxu0 %v1862_v50  ;;  %1401 = vmatpush.msrb.mxu1 %v1863_v49  ;;  %v1881_v49 = vld [vmem:[%s2419_s10 + $0x1] ss:$0 sm:$0xff] }
 0x947   : > { %1799 = vmatmul.msk.f32.vlgmr.msra.gmra.mxu0 %vm556_vm1, %v1325_v51 }
 0x948   : > { %1478 = vmatpush.msrb.mxu0 %v1803_v63  ;;  %1501 = vmatpush.msra.mxu1 %v1804_v0 }
 0x94a   : > { %v1919_v13 = vpop.eup %1918  ;;  %1636 = vmatpush.msra.mxu0 %v1826_v31 }
 0x94b   : > { %v1326_v52 = vmul.f32 %v1919_v13, %v1913_v37  ;;  %v1319_v54 = vpop.xlane.xlu1 %1318  ;;  %v1921_v55 = vpop.eup %1920  ;;  %v1821_v13 = vld [vmem:[%s2416_s7 + $0x50] sm:$0xff] }
 0x94c   : > { %1922 = vrcp.f32 %v1319_v54  ;;  %v1324_v61 = vmul.f32 %v1921_v55, %v1909_v29  ;;  %v1814_v29 = vld [vmem:[%s2414_s5 + $0x28] sm:$0xff]  ;;  %1637 = vmatpush.msra.mxu0 %v1825_v32  ;;  %v1882_v54 = vld [vmem:[%s2415_s6 + $0x1] ss:$0 sm:$0xff] }
 0x94d   : > { %1800 = vmatmul.msk.f32.vlgmr.msrb.gmra.mxu1 %vm556_vm1, %v1326_v52  ;;  %v1820_v52 = vld [vmem:[%s2416_s7 + $0x48] sm:$0xff] }
 0x94e   : > { %1638 = vmatpush.msra.mxu0 %v1824_v33 }
 0x950   : > { %1639 = vmatpush.msra.mxu0 %v1823_v36 }
 0x952   : > { %v1923_v56 = vpop.eup %1922  ;;  %1640 = vmatpush.msra.mxu0 %v1822_v38 }
 0x953   : > { %v1327_v62 = vmul.f32 %v1923_v56, %v1915_v40 }
 0x954   : > { %1641 = vmatpush.msra.mxu0 %v1821_v13 }
 0x956   : > { %1642 = vmatpush.msra.mxu0 %v1820_v52 }
 0x958   : > { %1643 = vmatpush.msra.mxu0 %v1819_v53 }
 0x963   : > { %v1856_v57 = vpop.permute.xlu1 %1855 }
 0x964   : > { %v1858_v58 = vunpack.i.h.bf16 %v1856_v57  ;;  %v1857_v59 = vunpack.i.l.bf16 %v1856_v57 }
 0x966   : > { %1349 = vmatpush.msra.mxu3 %v1857_v59  ;;  %1427 = vmatpush.msrb.mxu2 %v1858_v58  ;;  %v1883_v58 = vld [vmem:[%s2417_s8 + $0x1] ss:$0 sm:$0xff] }
 0x967   : > { %1798 = vmatmul.msk.f32.vlgmr.msra.gmra.mxu3 %vm556_vm1, %v1324_v61  ;;  %1801 = vmatmul.msk.f32.vlgmr.msrb.gmra.mxu2 %vm556_vm1, %v1327_v62 }
 0x968   : > { %1455 = vmatpush.msrb.mxu3 %v1802_v3  ;;  %1524 = vmatpush.msra.mxu2 %v1805_v4 }
 0x96a   : > { %1602 = vmatpush.msra.mxu3 %v1816_v28 }
 0x9c4   : > { %v1377_v1 = vpop.f32.mrf.mxu0 }
 0x9c5   : > { %1807 = vmatmul.msk.f32.vlgmr.msrb.gmra.mxu0 %vm556_vm1, %v1377_v1 }
 0x9ca   : > { %v1403_v2 = vpop.f32.mrf.mxu1 }
 0x9cb   : > { %1808 = vmatmul.msk.f32.vlgmr.msra.gmra.mxu1 %vm556_vm1, %v1403_v2 }
 0x9ea   : > { %v1351_v5 = vpop.f32.mrf.mxu3  ;;  %v1429_v6 = vpop.f32.mrf.mxu2 }
 0x9eb   : > { %1806 = vmatmul.msk.f32.vlgmr.msrb.gmra.mxu3 %vm556_vm1, %v1351_v5  ;;  %1809 = vmatmul.msk.f32.vlgmr.msra.gmra.mxu2 %vm556_vm1, %v1429_v6 }
 0xa42   : > { %v1480_v7 = vpop.f32.mrf.mxu0 }
 0xa43   : > { %v1530_v10 = vsel %vm469_vm0, %v1480_v7, 0.0 }
 0xa48   : > { %v1503_v8 = vpop.f32.mrf.mxu1 }
 0xa49   : > { %v1532_v15 = vsel %vm469_vm0, %v1503_v8, 0.0 }
 0xa6e   : > { %v1457_v9 = vpop.f32.mrf.mxu3  ;;  %v1526_v14 = vpop.f32.mrf.mxu2 }
 0xa6f   : > { %v1529_v11 = vsel %vm469_vm0, %v1457_v9, 0.0  ;;  %v1534_v18 = vsel %vm469_vm0, %v1526_v14, 0.0 }
 0xa70   : > { %v1531_v12 = vadd.f32 %v1530_v10, %v1529_v11 }
 0xa72   : > { %v1533_v16 = vadd.f32 %v1532_v15, %v1531_v12  ;;  %v1884_v15 = vld [vmem:[%s2420_s11 + $0x1] ss:$0 sm:$0xff] }
 0xa74   : > { %v1535_v19 = vadd.f32 %v1534_v18, %v1533_v16 }
 0xa76   : > { %v1541_v20 = vadd.f32 %v1879_v17, %v1535_v19 }
 0xa78   : > { %v1542_v21 = vadd.f32 %v1541_v20, %v2259_v60  ;;  %v1815_v60 = vld [vmem:[%s2414_s5 + $0x30] sm:$0xff] }
 0xa79   : > { %1603 = vmatpush.msra.mxu3 %v1815_v60 }
 0xa7a   : > { %v1543_v22 = vsel %vm469_vm0, %v1542_v21, 0.0 }
 0xa7b   : > { %1544 = vadd.xlane.f32.xlu0 %v1543_v22  ;;  %1604 = vmatpush.msra.mxu3 %v1814_v29 }
 0xa7d   : > { %1605 = vmatpush.msra.mxu3 %v1813_v30 }
 0xaee   : > { %v1545_v23 = vpop.xlane.xlu0 %1544 }
 0xaef   : > { %v1546_v24 = vmul.f32 %v1545_v23, %v2146_v47 }
 0xaf1   : > { %v1547_v25 = vsub.f32 %v1542_v21, %v1546_v24 }
 0xaf3   : > { %v1548_v26 = vmul.f32 %v1547_v25, %v1547_v25 }
 0xaf5   : > { %v1549_v27 = vsel %vm469_vm0, %v1548_v26, 0.0 }
 0xaf6   : > { %1550 = vadd.xlane.f32.xlu1 %v1549_v27 }
 0xb69   : > { %v1551_v34 = vpop.xlane.xlu1 %1550 }
 0xb6a   : > { %v1552_v35 = vmul.f32 %v1551_v34, %v2146_v47 }
 0xb6c   : > { %v1553_v37 = vadd.f32 1e-05, %v1552_v35 }
 0xb6e   : > { %1924 = vrsqrt.f32 %v1553_v37  ;;  %vm1560_vm11 = vweird.f32 %v1553_v37 }
 0xb74   : > { %v1925_v39 = vpop.eup %1924 }
 0xb75   : > { %v1555_v40 = vmul.f32 %v1925_v39, %v1553_v37  ;;  %vm1561_vm10 = vweird.f32 %v1925_v39 }
 0xb76   : > { %vm1562_vm12 = vmor %vm1560_vm11, %vm1561_vm10 }
 0xb77   : > { %v1556_v41 = vmul.f32 %v1925_v39, %v1555_v40 }
 0xb79   : > { %v1557_v42 = vmul.f32 0.5, %v1556_v41 }
 0xb7b   : > { %v1558_v43 = vsub.f32 1.5, %v1557_v42 }
 0xb7d   : > { %v1559_v44 = vmul.f32 %v1925_v39, %v1558_v43 }
 0xb7f   : > { %v1563_v46 = vsel %vm1562_vm12, %v1925_v39, %v1559_v44 }
 0xb80   : > { %v1564_v48 = vmul.f32 %v1563_v46, %v1547_v25 }
 0xb82   : > { %v1570_v50 = vmul.f32 %v1880_v45, %v1564_v48 }
 0xb84   : > { %v1576_v51 = vadd.f32 %v1881_v49, %v1570_v50 }
 0xb86   : > { %1818 = vmatmul.msk.f32.vlgmr.msra.gmra.mxu3 %vm469_vm0, %v1576_v51 }
 0xc09   : > { %v1607_v55 = vpop.f32.mrf.mxu3 }
 0xc0a   : > { %v1608_v56 = vadd.f32 %v1882_v54, %v1607_v55 }
 0xc0c   : > { %v1610_v57 = vmax.f32 %v1608_v56, 0.0 }
 0xc0e   : > { %1828 = vmatmul.msk.f32.vlgmr.msra.gmra.mxu0 %vm1002_vm6, %v1610_v57 }
 0xc8b   : > { %v1645_v59 = vpop.f32.mrf.mxu0 }
 0xc8c   : > { %v1646_v61 = vadd.f32 %v1883_v58, %v1645_v59 }
 0xc8e   : > { %v1648_v62 = vadd.f32 %v1646_v61, %v1576_v51 }
 0xc90   : > { %v1649_v63 = vsel %vm469_vm0, %v1648_v62, 0.0 }
 0xc91   : > { %1650 = vadd.xlane.f32.xlu0 %v1649_v63 }
 0xd04   : > { %v1651_v0 = vpop.xlane.xlu0 %1650 }
 0xd05   : > { %v1652_v1 = vmul.f32 %v1651_v0, %v2146_v47 }
 0xd07   : > { %v1653_v2 = vsub.f32 %v1648_v62, %v1652_v1 }
 0xd09   : > { %v1654_v3 = vmul.f32 %v1653_v2, %v1653_v2 }
 0xd0b   : > { %v1655_v4 = vsel %vm469_vm0, %v1654_v3, 0.0 }
 0xd0c   : > { %1656 = vadd.xlane.f32.xlu0 %v1655_v4 }
 0xd7f   : > { %v1657_v5 = vpop.xlane.xlu0 %1656 }
 0xd80   : > { %v1658_v6 = vmul.f32 %v1657_v5, %v2146_v47  ;;  %v1885_v47 = vld [vmem:[%s2421_s12 + $0x1] ss:$0 sm:$0xff] }
 0xd82   : > { %v1659_v7 = vadd.f32 1e-05, %v1658_v6 }
 0xd84   : > { %1926 = vrsqrt.f32 %v1659_v7  ;;  %vm1666_vm14 = vweird.f32 %v1659_v7 }
 0xd8a   : > { %v1927_v8 = vpop.eup %1926 }
 0xd8b   : > { %v1661_v9 = vmul.f32 %v1927_v8, %v1659_v7  ;;  %vm1667_vm13 = vweird.f32 %v1927_v8 }
 0xd8c   : > { %vm1668_vm15 = vmor %vm1666_vm14, %vm1667_vm13 }
 0xd8d   : > { %v1662_v10 = vmul.f32 %v1927_v8, %v1661_v9 }
 0xd8f   : > { %v1663_v11 = vmul.f32 0.5, %v1662_v10 }
 0xd91   : > { %v1664_v12 = vsub.f32 1.5, %v1663_v11 }
 0xd93   : > { %v1665_v14 = vmul.f32 %v1927_v8, %v1664_v12 }
 0xd95   : > { %v1669_v16 = vsel %vm1668_vm15, %v1927_v8, %v1665_v14 }
 0xd96   : > { %v1670_v17 = vmul.f32 %v1669_v16, %v1653_v2 }
 0xd98   : > { %v1676_v18 = vmul.f32 %v1884_v15, %v1670_v17 }
 0xd9a   : > { %v1682_v19 = vadd.f32 %v1885_v47, %v1676_v18 }
 0xd9c   : > { %1683 = vst.msk [vmem:[%s435_s20] sm:$0xff] %vm469_vm0, %v1682_v19 }
 0xd9d PF: > { %s23_s25 = sadd.s32 1, %s1934_s25  }
 0xd9e   : > { %p20_p4 = scmp.ge.s32.totalorder %s23_s25, 4  }
 0xda0   :  { %22 = sbr.rel (!%p20_p4) target bundleno = 1 (0x1), region = 114 }

</bundles_post_ra>
